<compile_context>
chip_gen: v7x
topology: tpu7x:2x2x1
jax: 0.10.0
libtpu: 0.0.40
codegen_flags: <defaults>
</compile_context>

<pallas_src>
import jax
import jax.numpy as jnp
from jax.experimental import pallas as pl
from jax.experimental.pallas import tpu as pltpu

# (in_features, out_features) for the 6 layers used in forward()
LAYER_DIMS = [(28 * 28, 512), (512, 256), (256, 128), (128, 64), (64, 32), (32, 16)]
BN_EPS = 1e-5
LANE = 128                    # lane-dense padded width of the final output slab
OUT_DIM = LAYER_DIMS[-1][1]   # 16 real output features
MAX_TB = 512                  # batch tile rows per grid step (safe for v7x VMEM)


def _round_up(n, m):
    return ((n + m - 1) // m) * m


def _mlp_kernel(x_ref, *rest):
    # rest = (W0, t0, W1, t1, ..., W5, t5, out_ref)
    #   W_i : (in, out) bf16 weights with BN scale pre-folded (last layer padded to 128 cols)
    #   t_i : (1, out) f32 folded shift (linear bias + BN shift)
    out_ref = rest[-1]
    param_refs = rest[:-1]
    n_layers = len(param_refs) // 2

    h = x_ref[...].astype(jnp.float32)
    for i in range(n_layers):
        w_ref = param_refs[2 * i + 0]
        t_ref = param_refs[2 * i + 1]
        # bf16 x bf16 MXU matmul with f32 accumulation.
        z = jnp.dot(h.astype(jnp.bfloat16), w_ref[...],
                    preferred_element_type=jnp.float32)
        h = jnp.maximum(z + t_ref[...], 0.0)
        # dropout(p=0.25) is identity in eval mode.
    out_ref[...] = h.astype(out_ref.dtype)


def mlp_forward(x, params):
    """x: (B, 784) float32. params: flat list [W0, t0, ..., W5, t5] from init_params."""
    B, in_dim = x.shape

    # Batch tile: multiple of 8 sublanes, capped so tiles + weights fit v7x VMEM.
    tb = min(MAX_TB, _round_up(max(B, 8), 8))
    b_pad = _round_up(B, tb)
    if b_pad != B:
        x = jnp.pad(x, ((0, b_pad - B), (0, 0)))
    grid = (b_pad // tb,)

    # Activations: batch-tiled. Weights/shifts: constant index_map -> VMEM-resident.
    in_specs = [pl.BlockSpec((tb, in_dim), lambda i: (i, 0))]
    for p in params:
        in_specs.append(pl.BlockSpec(p.shape, lambda i: (0, 0)))
    out_specs = pl.BlockSpec((tb, LANE), lambda i: (i, 0))

    # Advisory cost estimate for XLA scheduling around the custom call.
    flops = 0
    weight_bytes = 0
    shift_bytes = 0
    for w, t in zip(params[0::2], params[1::2]):
        flops += 2 * b_pad * w.shape[0] * w.shape[1]
        weight_bytes += w.size * w.dtype.itemsize
        shift_bytes += t.size * t.dtype.itemsize
    bytes_accessed = weight_bytes + shift_bytes + x.size * 4 + b_pad * LANE * 4

    out = pl.pallas_call(
        _mlp_kernel,
        out_shape=jax.ShapeDtypeStruct((b_pad, LANE), jnp.float32),
        grid=grid,
        in_specs=in_specs,
        out_specs=out_specs,
        compiler_params=pltpu.CompilerParams(dimension_semantics=("parallel",)),
        cost_estimate=pl.CostEstimate(flops=flops, transcendentals=0,
                                      bytes_accessed=bytes_accessed),
    )(x, *params)
    return out[:B, :OUT_DIM]


def init_params(key):
    """Deterministic synthetic parameters matching the PyTorch module shapes.

    Returns flat list [W0, t0, ..., W5, t5]:
      W_i: (in, out) bf16, linear weight transposed with BN(eval) scale folded in
           (final layer zero-padded to 128 output columns for lane-dense stores).
      t_i: (1, out) f32, folded shift = (linear_bias - running_mean) * scale + beta.
    """
    params = []
    n_layers = len(LAYER_DIMS)
    for li, (fan_in, fan_out) in enumerate(LAYER_DIMS):
        k = jax.random.fold_in(key, li)
        kw, kb, kg, kbeta, krm, krv = jax.random.split(k, 6)
        bound = 1.0 / jnp.sqrt(float(fan_in))
        # Linear: weight (out, in) in PyTorch -> stored transposed as (in, out)
        W = jax.random.uniform(kw, (fan_in, fan_out), jnp.float32, -bound, bound)
        b = jax.random.uniform(kb, (fan_out,), jnp.float32, -bound, bound)
        # BatchNorm1d params + running stats (eval mode)
        gamma = 1.0 + 0.1 * jax.random.normal(kg, (fan_out,), jnp.float32)
        beta = 0.1 * jax.random.normal(kbeta, (fan_out,), jnp.float32)
        running_mean = 0.1 * jax.random.normal(krm, (fan_out,), jnp.float32)
        running_var = 1.0 + 0.1 * jnp.abs(jax.random.normal(krv, (fan_out,), jnp.float32))
        # Fold BN (eval) scale into the weight, bias+shift into t.
        s = gamma / jnp.sqrt(running_var + BN_EPS)
        t = (b - running_mean) * s + beta
        Wf = W * s[None, :]
        if li == n_layers - 1:
            # Pad last layer to a lane-dense 128-wide output (zeros -> relu(0)=0, sliced off).
            Wf = jnp.pad(Wf, ((0, 0), (0, LANE - fan_out)))
            t = jnp.pad(t, ((0, LANE - fan_out),))
        params += [Wf.astype(jnp.bfloat16), t.reshape(1, -1).astype(jnp.float32)]
    # TODO(synk): fc6 (16 -> 10) exists in __init__ but is never used in forward(); omitted.
    return params


def reference_forward(x, params):
    """Pure-JAX reference performing the same bf16-weight / f32-accumulate math."""
    h = x.astype(jnp.float32)
    for i in range(len(LAYER_DIMS)):
        W, t = params[2 * i], params[2 * i + 1]
        z = jnp.dot(h.astype(jnp.bfloat16), W, preferred_element_type=jnp.float32)
        h = jnp.maximum(z + t, 0.0)
    return h[:, :OUT_DIM]


if __name__ == "__main__":
    key = jax.random.PRNGKey(0)
    kx, kp = jax.random.split(key)
    B = 8
    x = jax.random.normal(kx, (B, 28 * 28), jnp.float32)
    params = init_params(kp)

    out = jax.block_until_ready(mlp_forward(x, params))
    ref = reference_forward(x, params)

    assert out.shape == (B, OUT_DIM), out.shape
    max_err = float(jnp.max(jnp.abs(out - ref)))
    assert jnp.allclose(out, ref, atol=2e-2, rtol=2e-2), max_err
    print("KERNEL_OK")
</pallas_src>

<mosaic_0001>
module attributes {stable_mosaic.version = 11 : i64} {
  func.func @_mlp_kernel(%arg0: i32, %arg1: memref<8x784xf32, #tpu.memory_space<vmem>>, %arg2: memref<784x512xbf16, #tpu.memory_space<vmem>>, %arg3: memref<1x512xf32, #tpu.memory_space<vmem>>, %arg4: memref<512x256xbf16, #tpu.memory_space<vmem>>, %arg5: memref<1x256xf32, #tpu.memory_space<vmem>>, %arg6: memref<256x128xbf16, #tpu.memory_space<vmem>>, %arg7: memref<1x128xf32, #tpu.memory_space<vmem>>, %arg8: memref<128x64xbf16, #tpu.memory_space<vmem>>, %arg9: memref<1x64xf32, #tpu.memory_space<vmem>>, %arg10: memref<64x32xbf16, #tpu.memory_space<vmem>>, %arg11: memref<1x32xf32, #tpu.memory_space<vmem>>, %arg12: memref<32x128xbf16, #tpu.memory_space<vmem>>, %arg13: memref<1x128xf32, #tpu.memory_space<vmem>>, %arg14: memref<8x128xf32, #tpu.memory_space<vmem>>) attributes {dimension_semantics = [#tpu.dimension_semantics<parallel>], iteration_bounds = array<i64: 1>, scalar_prefetch = 0 : i64, scratch_operands = 0 : i64, tpu.core_type = #tpu.core_type<tc>, window_params = [{transform_indices = @transform_0, window_bounds = array<i64: 8, 784>}, {pipeline_mode = #tpu.pipeline_mode<synchronous>, transform_indices = @transform_1, window_bounds = array<i64: 784, 512>}, {pipeline_mode = #tpu.pipeline_mode<synchronous>, transform_indices = @transform_2, window_bounds = array<i64: 1, 512>}, {pipeline_mode = #tpu.pipeline_mode<synchronous>, transform_indices = @transform_3, window_bounds = array<i64: 512, 256>}, {pipeline_mode = #tpu.pipeline_mode<synchronous>, transform_indices = @transform_4, window_bounds = array<i64: 1, 256>}, {pipeline_mode = #tpu.pipeline_mode<synchronous>, transform_indices = @transform_5, window_bounds = array<i64: 256, 128>}, {pipeline_mode = #tpu.pipeline_mode<synchronous>, transform_indices = @transform_6, window_bounds = array<i64: 1, 128>}, {pipeline_mode = #tpu.pipeline_mode<synchronous>, transform_indices = @transform_7, window_bounds = array<i64: 128, 64>}, {pipeline_mode = #tpu.pipeline_mode<synchronous>, transform_indices = @transform_8, window_bounds = array<i64: 1, 64>}, {pipeline_mode = #tpu.pipeline_mode<synchronous>, transform_indices = @transform_9, window_bounds = array<i64: 64, 32>}, {pipeline_mode = #tpu.pipeline_mode<synchronous>, transform_indices = @transform_10, window_bounds = array<i64: 1, 32>}, {pipeline_mode = #tpu.pipeline_mode<synchronous>, transform_indices = @transform_11, window_bounds = array<i64: 32, 128>}, {pipeline_mode = #tpu.pipeline_mode<synchronous>, transform_indices = @transform_12, window_bounds = array<i64: 1, 128>}, {transform_indices = @transform_13, window_bounds = array<i64: 8, 128>}]} {
    %c0 = arith.constant 0 : index
    %c0_0 = arith.constant 0 : index
    %0 = vector.load %arg1[%c0, %c0_0] : memref<8x784xf32, #tpu.memory_space<vmem>>, vector<8x784xf32>
    %1 = arith.truncf %0 : vector<8x784xf32> to vector<8x784xbf16>
    %c0_1 = arith.constant 0 : index
    %c0_2 = arith.constant 0 : index
    %2 = vector.load %arg2[%c0_1, %c0_2] : memref<784x512xbf16, #tpu.memory_space<vmem>>, vector<784x512xbf16>
    %cst = arith.constant dense<0.000000e+00> : vector<8x512xf32>
    %3 = tpu.matmul %1, %2, %cst {dimension_numbers = #tpu.dot_dimension_numbers<[1], [0], [0], [1], [0, 0, 1, 1], [], []>} : vector<8x784xbf16>, vector<784x512xbf16>, vector<8x512xf32> -> vector<8x512xf32>
    %c0_3 = arith.constant 0 : index
    %c0_4 = arith.constant 0 : index
    %4 = vector.load %arg3[%c0_3, %c0_4] : memref<1x512xf32, #tpu.memory_space<vmem>>, vector<1x512xf32>
    %5 = vector.broadcast %4 : vector<1x512xf32> to vector<8x512xf32>
    %6 = arith.addf %3, %5 : vector<8x512xf32>
    %cst_5 = arith.constant 0.000000e+00 : f32
    %7 = vector.broadcast %cst_5 : f32 to vector<8x512xf32>
    %8 = arith.maximumf %6, %7 : vector<8x512xf32>
    %9 = arith.truncf %8 : vector<8x512xf32> to vector<8x512xbf16>
    %c0_6 = arith.constant 0 : index
    %c0_7 = arith.constant 0 : index
    %10 = vector.load %arg4[%c0_6, %c0_7] : memref<512x256xbf16, #tpu.memory_space<vmem>>, vector<512x256xbf16>
    %cst_8 = arith.constant dense<0.000000e+00> : vector<8x256xf32>
    %11 = tpu.matmul %9, %10, %cst_8 {dimension_numbers = #tpu.dot_dimension_numbers<[1], [0], [0], [1], [0, 0, 1, 1], [], []>} : vector<8x512xbf16>, vector<512x256xbf16>, vector<8x256xf32> -> vector<8x256xf32>
    %c0_9 = arith.constant 0 : index
    %c0_10 = arith.constant 0 : index
    %12 = vector.load %arg5[%c0_9, %c0_10] : memref<1x256xf32, #tpu.memory_space<vmem>>, vector<1x256xf32>
    %13 = vector.broadcast %12 : vector<1x256xf32> to vector<8x256xf32>
    %14 = arith.addf %11, %13 : vector<8x256xf32>
    %cst_11 = arith.constant 0.000000e+00 : f32
    %15 = vector.broadcast %cst_11 : f32 to vector<8x256xf32>
    %16 = arith.maximumf %14, %15 : vector<8x256xf32>
    %17 = arith.truncf %16 : vector<8x256xf32> to vector<8x256xbf16>
    %c0_12 = arith.constant 0 : index
    %c0_13 = arith.constant 0 : index
    %18 = vector.load %arg6[%c0_12, %c0_13] : memref<256x128xbf16, #tpu.memory_space<vmem>>, vector<256x128xbf16>
    %cst_14 = arith.constant dense<0.000000e+00> : vector<8x128xf32>
    %19 = tpu.matmul %17, %18, %cst_14 {dimension_numbers = #tpu.dot_dimension_numbers<[1], [0], [0], [1], [0, 0, 1, 1], [], []>} : vector<8x256xbf16>, vector<256x128xbf16>, vector<8x128xf32> -> vector<8x128xf32>
    %c0_15 = arith.constant 0 : index
    %c0_16 = arith.constant 0 : index
    %20 = vector.load %arg7[%c0_15, %c0_16] : memref<1x128xf32, #tpu.memory_space<vmem>>, vector<1x128xf32>
    %21 = vector.broadcast %20 : vector<1x128xf32> to vector<8x128xf32>
    %22 = arith.addf %19, %21 : vector<8x128xf32>
    %cst_17 = arith.constant 0.000000e+00 : f32
    %23 = vector.broadcast %cst_17 : f32 to vector<8x128xf32>
    %24 = arith.maximumf %22, %23 : vector<8x128xf32>
    %25 = arith.truncf %24 : vector<8x128xf32> to vector<8x128xbf16>
    %c0_18 = arith.constant 0 : index
    %c0_19 = arith.constant 0 : index
    %26 = vector.load %arg8[%c0_18, %c0_19] : memref<128x64xbf16, #tpu.memory_space<vmem>>, vector<128x64xbf16>
    %cst_20 = arith.constant dense<0.000000e+00> : vector<8x64xf32>
    %27 = tpu.matmul %25, %26, %cst_20 {dimension_numbers = #tpu.dot_dimension_numbers<[1], [0], [0], [1], [0, 0, 1, 1], [], []>} : vector<8x128xbf16>, vector<128x64xbf16>, vector<8x64xf32> -> vector<8x64xf32>
    %c0_21 = arith.constant 0 : index
    %c0_22 = arith.constant 0 : index
    %28 = vector.load %arg9[%c0_21, %c0_22] : memref<1x64xf32, #tpu.memory_space<vmem>>, vector<1x64xf32>
    %29 = vector.broadcast %28 : vector<1x64xf32> to vector<8x64xf32>
    %30 = arith.addf %27, %29 : vector<8x64xf32>
    %cst_23 = arith.constant 0.000000e+00 : f32
    %31 = vector.broadcast %cst_23 : f32 to vector<8x64xf32>
    %32 = arith.maximumf %30, %31 : vector<8x64xf32>
    %33 = arith.truncf %32 : vector<8x64xf32> to vector<8x64xbf16>
    %c0_24 = arith.constant 0 : index
    %c0_25 = arith.constant 0 : index
    %34 = vector.load %arg10[%c0_24, %c0_25] : memref<64x32xbf16, #tpu.memory_space<vmem>>, vector<64x32xbf16>
    %cst_26 = arith.constant dense<0.000000e+00> : vector<8x32xf32>
    %35 = tpu.matmul %33, %34, %cst_26 {dimension_numbers = #tpu.dot_dimension_numbers<[1], [0], [0], [1], [0, 0, 1, 1], [], []>} : vector<8x64xbf16>, vector<64x32xbf16>, vector<8x32xf32> -> vector<8x32xf32>
    %c0_27 = arith.constant 0 : index
    %c0_28 = arith.constant 0 : index
    %36 = vector.load %arg11[%c0_27, %c0_28] : memref<1x32xf32, #tpu.memory_space<vmem>>, vector<1x32xf32>
    %37 = vector.broadcast %36 : vector<1x32xf32> to vector<8x32xf32>
    %38 = arith.addf %35, %37 : vector<8x32xf32>
    %cst_29 = arith.constant 0.000000e+00 : f32
    %39 = vector.broadcast %cst_29 : f32 to vector<8x32xf32>
    %40 = arith.maximumf %38, %39 : vector<8x32xf32>
    %41 = arith.truncf %40 : vector<8x32xf32> to vector<8x32xbf16>
    %c0_30 = arith.constant 0 : index
    %c0_31 = arith.constant 0 : index
    %42 = vector.load %arg12[%c0_30, %c0_31] : memref<32x128xbf16, #tpu.memory_space<vmem>>, vector<32x128xbf16>
    %cst_32 = arith.constant dense<0.000000e+00> : vector<8x128xf32>
    %43 = tpu.matmul %41, %42, %cst_32 {dimension_numbers = #tpu.dot_dimension_numbers<[1], [0], [0], [1], [0, 0, 1, 1], [], []>} : vector<8x32xbf16>, vector<32x128xbf16>, vector<8x128xf32> -> vector<8x128xf32>
    %c0_33 = arith.constant 0 : index
    %c0_34 = arith.constant 0 : index
    %44 = vector.load %arg13[%c0_33, %c0_34] : memref<1x128xf32, #tpu.memory_space<vmem>>, vector<1x128xf32>
    %45 = vector.broadcast %44 : vector<1x128xf32> to vector<8x128xf32>
    %46 = arith.addf %43, %45 : vector<8x128xf32>
    %cst_35 = arith.constant 0.000000e+00 : f32
    %47 = vector.broadcast %cst_35 : f32 to vector<8x128xf32>
    %48 = arith.maximumf %46, %47 : vector<8x128xf32>
    %c0_36 = arith.constant 0 : index
    %c0_37 = arith.constant 0 : index
    %49 = vector.load %arg14[%c0_36, %c0_37] : memref<8x128xf32, #tpu.memory_space<vmem>>, vector<8x128xf32>
    tpu.vector_store %arg14[%c0_36, %c0_37], %48 {strides = array<i32>} : memref<8x128xf32, #tpu.memory_space<vmem>>, vector<8x128xf32>,
    return
  }
  func.func @transform_0(%arg0: i32) -> (i32, i32) {
    %c0_i32 = arith.constant 0 : i32
    %c0_i32_0 = arith.constant 0 : i32
    return %arg0, %c0_i32 : i32, i32
  }
  func.func @transform_1(%arg0: i32) -> (i32, i32) {
    %c0_i32 = arith.constant 0 : i32
    %c0_i32_0 = arith.constant 0 : i32
    %c0_i32_1 = arith.constant 0 : i32
    return %c0_i32, %c0_i32_0 : i32, i32
  }
  func.func @transform_2(%arg0: i32) -> (i32, i32) {
    %c0_i32 = arith.constant 0 : i32
    %c0_i32_0 = arith.constant 0 : i32
    %c0_i32_1 = arith.constant 0 : i32
    return %c0_i32, %c0_i32_0 : i32, i32
  }
  func.func @transform_3(%arg0: i32) -> (i32, i32) {
    %c0_i32 = arith.constant 0 : i32
    %c0_i32_0 = arith.constant 0 : i32
    %c0_i32_1 = arith.constant 0 : i32
    return %c0_i32, %c0_i32_0 : i32, i32
  }
  func.func @transform_4(%arg0: i32) -> (i32, i32) {
    %c0_i32 = arith.constant 0 : i32
    %c0_i32_0 = arith.constant 0 : i32
    %c0_i32_1 = arith.constant 0 : i32
    return %c0_i32, %c0_i32_0 : i32, i32
  }
  func.func @transform_5(%arg0: i32) -> (i32, i32) {
    %c0_i32 = arith.constant 0 : i32
    %c0_i32_0 = arith.constant 0 : i32
    %c0_i32_1 = arith.constant 0 : i32
    return %c0_i32, %c0_i32_0 : i32, i32
  }
  func.func @transform_6(%arg0: i32) -> (i32, i32) {
    %c0_i32 = arith.constant 0 : i32
    %c0_i32_0 = arith.constant 0 : i32
    %c0_i32_1 = arith.constant 0 : i32
    return %c0_i32, %c0_i32_0 : i32, i32
  }
  func.func @transform_7(%arg0: i32) -> (i32, i32) {
    %c0_i32 = arith.constant 0 : i32
    %c0_i32_0 = arith.constant 0 : i32
    %c0_i32_1 = arith.constant 0 : i32
    return %c0_i32, %c0_i32_0 : i32, i32
  }
  func.func @transform_8(%arg0: i32) -> (i32, i32) {
    %c0_i32 = arith.constant 0 : i32
    %c0_i32_0 = arith.constant 0 : i32
    %c0_i32_1 = arith.constant 0 : i32
    return %c0_i32, %c0_i32_0 : i32, i32
  }
  func.func @transform_9(%arg0: i32) -> (i32, i32) {
    %c0_i32 = arith.constant 0 : i32
    %c0_i32_0 = arith.constant 0 : i32
    %c0_i32_1 = arith.constant 0 : i32
    return %c0_i32, %c0_i32_0 : i32, i32
  }
  func.func @transform_10(%arg0: i32) -> (i32, i32) {
    %c0_i32 = arith.constant 0 : i32
    %c0_i32_0 = arith.constant 0 : i32
    %c0_i32_1 = arith.constant 0 : i32
    return %c0_i32, %c0_i32_0 : i32, i32
  }
  func.func @transform_11(%arg0: i32) -> (i32, i32) {
    %c0_i32 = arith.constant 0 : i32
    %c0_i32_0 = arith.constant 0 : i32
    %c0_i32_1 = arith.constant 0 : i32
    return %c0_i32, %c0_i32_0 : i32, i32
  }
  func.func @transform_12(%arg0: i32) -> (i32, i32) {
    %c0_i32 = arith.constant 0 : i32
    %c0_i32_0 = arith.constant 0 : i32
    %c0_i32_1 = arith.constant 0 : i32
    return %c0_i32, %c0_i32_0 : i32, i32
  }
  func.func @transform_13(%arg0: i32) -> (i32, i32) {
    %c0_i32 = arith.constant 0 : i32
    %c0_i32_0 = arith.constant 0 : i32
    return %arg0, %c0_i32 : i32, i32
  }
}

</mosaic_0001>

<bundles_post_ra>
// kernel: tpu_custom_call.1
= control target key start
LH: loop header
LB: loop body
LE: loop exit
PB: predicated region body
PF: predicated region fallthrough
CT: control target
= control target key end

     0   :  { %18 = vsyncpa [#allocation3], 0  ;;  %s3944_s0 = inlined_call_operand.hbm [shape: f32[8,784], index: 0, kind: input, shape index: {}]   ;;  %s3945_s1 = inlined_call_operand.hbm [shape: bf16[784,512], index: 1, kind: input, shape index: {}]   ;;  %s3946_s2 = inlined_call_operand.hbm [shape: f32[1,512], index: 2, kind: input, shape index: {}]   ;;  %s3947_s3 = inlined_call_operand.hbm [shape: bf16[512,256], index: 3, kind: input, shape index: {}]   ;;  %s3948_s4 = inlined_call_operand.vmem [shape: f32[1,256], index: 4, kind: input, shape index: {}]   ;;  %s3949_s5 = inlined_call_operand.vmem [shape: bf16[256,128], index: 5, kind: input, shape index: {}]   ;;  %s3950_s6 = inlined_call_operand.hbm [shape: f32[1,128], index: 6, kind: input, shape index: {}]   ;;  %s3951_s7 = inlined_call_operand.vmem [shape: bf16[128,64], index: 7, kind: input, shape index: {}]   ;;  %s3952_s8 = inlined_call_operand.hbm [shape: f32[1,64], index: 8, kind: input, shape index: {}]   ;;  %s3953_s9 = inlined_call_operand.vmem [shape: bf16[64,32], index: 9, kind: input, shape index: {}]   ;;  %s3954_s10 = inlined_call_operand.vmem [shape: f32[1,32], index: 10, kind: input, shape index: {}]   ;;  %s3955_s11 = inlined_call_operand.vmem [shape: bf16[32,128], index: 11, kind: input, shape index: {}]   ;;  %s3956_s12 = inlined_call_operand.vmem [shape: f32[1,128], index: 12, kind: input, shape index: {}]   ;;  %s3957_s13 = inlined_call_operand.hbm [shape: f32[8,128], index: 13, kind: output, shape index: {}]  }
   0x1   :  { %19 = vsyncpa [#allocation6], 0 }
   0x2   :  { %20 = vsyncpa [#allocation9], 0 }
   0x3   :  { %21 = vsyncpa [#allocation12], 0 }
   0x4   :  { %22 = vsyncpa [#allocation4], 0  ;;  %s3623_s25 = smov [#allocation5]   ;;  %s3459_s29 = scalar_lea.hbm %s3945_s1, 25088 }
   0x5   :  { %s38_s26 = sshll.u32 %s3623_s25, 4  ;;  %p3460_p0 = scmp.ne.s32.totalorder %s3945_s1, %s3459_s29  ;;  %s39_s26 = int_to_ptr.vmem [resolvable:$true] %s38_s26 }
   0x6   :  { %p3463_p1 = scmp.lt.u32.totalorder %s3459_s29, %s3945_s1 }
   0x8   :  { %p3465_p2 = pnand %p3463_p1, %p3460_p0 }
   0xa   :  { %3468 = shalt.err (!%p3465_p2)
}
   0xb   :  { %s3469_s17 = scalar_lea.vmem %s39_s26, 25088  ;;  %p3474_p4 = scmp.lt.s32.totalorder %s39_s26, %s39_s26 }
   0xc   :  { %p3470_p3 = scmp.ne.s32.totalorder %s39_s26, %s3469_s17  ;;  %p3475_p5 = scmp.lt.s32.totalorder %s3469_s17, %s3469_s17 }
   0xe   :  { %p3476_p6 = por %p3475_p5, %p3474_p4 }
  0x10   :  { %p3477_p7 = pnand %p3476_p6, %p3470_p3 }
  0x12   :  { %3480 = shalt.err (!%p3477_p7)
}
  0x13   :  { %s3624_s18 = smov 256   ;;  %s3625_s19 = smov 16  }
  0x14   :  { %44 = dma.hbm_to_vmem [thread:$0]  %s3945_s1, 25088, %s39_s26, [#allocation6], %s3624_s18, %s3624_s18, %s3625_s19  }
  0x15   :  { %s3626_s22 = smov [#allocation8]   ;;  %s3481_s27 = scalar_lea.hbm %s3947_s3, 8192 }
  0x16   :  { %s60_s23 = sshll.u32 %s3626_s22, 4  ;;  %p3482_p8 = scmp.ne.s32.totalorder %s3947_s3, %s3481_s27  ;;  %s61_s23 = int_to_ptr.vmem [resolvable:$true] %s60_s23 }
  0x17   :  { %p3485_p9 = scmp.lt.u32.totalorder %s3481_s27, %s3947_s3 }
  0x19   :  { %p3487_p10 = pnand %p3485_p9, %p3482_p8 }
  0x1b   :  { %3490 = shalt.err (!%p3487_p10)
}
  0x1c   :  { %s3491_s15 = scalar_lea.vmem %s61_s23, 8192  ;;  %p3496_p12 = scmp.lt.s32.totalorder %s61_s23, %s61_s23 }
  0x1d   :  { %p3492_p11 = scmp.ne.s32.totalorder %s61_s23, %s3491_s15  ;;  %p3497_p13 = scmp.lt.s32.totalorder %s3491_s15, %s3491_s15 }
  0x1f   :  { %p3498_p0 = por %p3497_p13, %p3496_p12 }
  0x21   :  { %p3499_p1 = pnand %p3498_p0, %p3492_p11 }
  0x23   :  { %3502 = shalt.err (!%p3499_p1)
}
  0x24   :  { %s3627_s1 = smov 128   ;;  %s3628_s26 = smov 8  }
  0x25   :  { %66 = dma.hbm_to_vmem [thread:$0]  %s3947_s3, 8192, %s61_s23, [#allocation9], %s3627_s1, %s3627_s1, %s3628_s26  }
  0x26   :  { %s3629_s18 = smov [#allocation2]   ;;  %s3630_s20 = smov [#allocation7]  }
  0x27   :  { %s29_s19 = sshll.u32 %s3629_s18, 4  ;;  %s51_s21 = sshll.u32 %s3630_s20, 4  ;;  %s30_s19 = int_to_ptr.vmem [resolvable:$true] %s29_s19  ;;  %s52_s21 = int_to_ptr.vmem [resolvable:$true] %s51_s21 }
  0x28   :  { %s3503_s25 = scalar_lea.hbm %s3944_s0, 896 }
  0x29   :  { %p3504_p2 = scmp.ne.s32.totalorder %s3944_s0, %s3503_s25  ;;  %p3507_p3 = scmp.lt.u32.totalorder %s3503_s25, %s3944_s0 }
  0x2b   :  { %p3509_p4 = pnand %p3507_p3, %p3504_p2 }
  0x2d   :  { %3512 = shalt.err (!%p3509_p4)
}
  0x2e   :  { %s3513_s3 = scalar_lea.vmem %s30_s19, 896  ;;  %p3518_p6 = scmp.lt.s32.totalorder %s30_s19, %s30_s19 }
  0x2f   :  { %p3514_p5 = scmp.ne.s32.totalorder %s30_s19, %s3513_s3  ;;  %p3519_p7 = scmp.lt.s32.totalorder %s3513_s3, %s3513_s3 }
  0x31   :  { %p3520_p8 = por %p3519_p7, %p3518_p6 }
  0x33   :  { %p3521_p9 = pnand %p3520_p8, %p3514_p5 }
  0x35   :  { %3524 = shalt.err (!%p3521_p9)
}
  0x36   :  { %32 = dma.hbm_to_vmem [thread:$0]  %s3944_s0, 896, %s30_s19, [#allocation3]  }
  0x37   :  { %s3525_s26 = scalar_lea.hbm %s3946_s2, 64 }
  0x38   :  { %p3526_p10 = scmp.ne.s32.totalorder %s3946_s2, %s3525_s26  ;;  %p3529_p11 = scmp.lt.u32.totalorder %s3525_s26, %s3946_s2 }
  0x3a   :  { %p3531_p12 = pnand %p3529_p11, %p3526_p10 }
  0x3c   :  { %3534 = shalt.err (!%p3531_p12)
}
  0x3d   :  { %s3535_s22 = scalar_lea.vmem %s52_s21, 64  ;;  %p3540_p0 = scmp.lt.s32.totalorder %s52_s21, %s52_s21 }
  0x3e   :  { %p3536_p13 = scmp.ne.s32.totalorder %s52_s21, %s3535_s22  ;;  %p3541_p1 = scmp.lt.s32.totalorder %s3535_s22, %s3535_s22 }
  0x40   :  { %p3542_p2 = por %p3541_p1, %p3540_p0 }
  0x42   :  { %p3543_p3 = pnand %p3542_p2, %p3536_p13 }
  0x44   :  { %3546 = shalt.err (!%p3543_p3)
}
  0x45   :  { %54 = dma.hbm_to_vmem [thread:$0]  %s3946_s2, 64, %s52_s21, [#allocation6]  }
  0x46   :  { %s3631_s24 = smov [#allocation10]   ;;  %s3632_s27 = smov [#allocation11]  }
  0x47   :  { %s77_s25 = sshll.u32 %s3631_s24, 4  ;;  %s89_s28 = sshll.u32 %s3632_s27, 4  ;;  %s78_s25 = int_to_ptr.vmem [resolvable:$true] %s77_s25  ;;  %s90_s28 = int_to_ptr.vmem [resolvable:$true] %s89_s28 }
  0x48   :  { %s3547_s3 = scalar_lea.hbm %s3950_s6, 16 }
  0x49   :  { %p3548_p4 = scmp.ne.s32.totalorder %s3950_s6, %s3547_s3  ;;  %p3551_p5 = scmp.lt.u32.totalorder %s3547_s3, %s3950_s6 }
  0x4b   :  { %p3553_p6 = pnand %p3551_p5, %p3548_p4 }
  0x4d   :  { %3556 = shalt.err (!%p3553_p6)
}
  0x4e   :  { %s3557_s2 = scalar_lea.vmem %s78_s25, 16  ;;  %s3561_s21 = scalar_lea.vmem %s78_s25, 32 }
  0x4f   :  { %p3558_p7 = scmp.ne.s32.totalorder %s78_s25, %s3557_s2  ;;  %p3562_p8 = scmp.lt.s32.totalorder %s78_s25, %s78_s25 }
  0x50   :  { %p3563_p9 = scmp.lt.s32.totalorder %s3561_s21, %s3557_s2 }
  0x52   :  { %p3564_p10 = por %p3563_p9, %p3562_p8 }
  0x54   :  { %p3565_p11 = pnand %p3564_p10, %p3558_p7 }
  0x56   :  { %3568 = shalt.err (!%p3565_p11)
}
  0x57   :  { %80 = dma.hbm_to_vmem [thread:$0]  %s3950_s6, 16, %s78_s25, [#allocation9]  }
  0x58   :  { %s3569_s20 = scalar_lea.hbm %s3952_s8, 16 }
  0x59   :  { %p3570_p12 = scmp.ne.s32.totalorder %s3952_s8, %s3569_s20  ;;  %p3573_p13 = scmp.lt.u32.totalorder %s3569_s20, %s3952_s8 }
  0x5b   :  { %p3575_p0 = pnand %p3573_p13, %p3570_p12 }
  0x5d   :  { %3578 = shalt.err (!%p3575_p0)
}
  0x5e   :  { %s3579_s27 = scalar_lea.vmem %s90_s28, 16  ;;  %s3583_s29 = scalar_lea.vmem %s90_s28, 32 }
  0x5f   :  { %p3580_p1 = scmp.ne.s32.totalorder %s90_s28, %s3579_s27  ;;  %p3584_p2 = scmp.lt.s32.totalorder %s90_s28, %s90_s28 }
  0x60   :  { %p3585_p3 = scmp.lt.s32.totalorder %s3583_s29, %s3579_s27 }
  0x62   :  { %p3586_p4 = por %p3585_p3, %p3584_p2 }
  0x64   :  { %p3587_p5 = pnand %p3586_p4, %p3580_p1 }
  0x66   :  { %3590 = shalt.err (!%p3587_p5)
}
  0x67   :  { %92 = dma.hbm_to_vmem [thread:$0]  %s3952_s8, 16, %s90_s28, [#allocation12]  }
  0x68   :  { %3613 = dma.done.wait [#allocation3], 896  }
  0x69   :  { %3614 = vsyncadd [#allocation3], 4294966400 }
  0x6a   :  { %3615 = dma.done.wait [#allocation6], 25152  }
  0x6b   :  { %3616 = vsyncadd [#allocation6], 4294942144 }
  0x6c   :  { %3617 = dma.done.wait [#allocation9], 8208  }
  0x6d   :  { %3618 = vsyncadd [#allocation9], 4294959088 }
  0x6e   :  { %3619 = dma.done.wait [#allocation12], 16  }
  0x6f   :  { %3620 = vsyncadd [#allocation12], 4294967280  ;;  %v3633_v0 = vmov 0   ;;  %v3039_v1 = vld [vmem:[#allocation5 + $0x4] ss:$16 sps:$4 sm:$0xff]   ;;  %v126_v9 = vld [vmem:[#allocation2 + $0x30] sm:$0xff] }
  0x70   :  { %1491 = vmatprep.mubr.bf16.mxu1 %v3633_v0  ;;  %v3041_v2 = vld [vmem:[#allocation5 + $0x604] ss:$16 sps:$4 sm:$0xff]   ;;  %1336 = vmatprep.subr.bf16.mxu0 %v3039_v1  ;;  %v3043_v3 = vld [vmem:[#allocation5] ss:$16 sps:$4 sm:$0xff]   ;;  %v3047_v6 = vld [vmem:[#allocation5 + $0x8] ss:$16 sps:$4 sm:$0xff]   ;;  %v3780_v10 = vpack.c.bf16 %v126_v9, %v126_v9 }
  0x71   :  { %v3044_v4 = vld [vmem:[#allocation5 + $0x600] ss:$16 sps:$4 sm:$0xff]   ;;  %1459 = vmatprep.subr.bf16.mxu1 %v3041_v2  ;;  %v3045_v5 = vld [vmem:[#allocation5 + $0x24] ss:$16 sps:$4 sm:$0xff]   ;;  %1337 = vmatpush1.bf16.msra.mxu0 %v3043_v3  ;;  %v3049_v7 = vld [vmem:[#allocation5 + $0xc] ss:$16 sps:$4 sm:$0xff]  }
  0x72   :  { %1460 = vmatpush1.bf16.msra.mxu1 %v3044_v4  ;;  %1338 = vmatprep.subr.bf16.mxu0 %v3045_v5  ;;  %v3050_v8 = vld [vmem:[#allocation5 + $0x20] ss:$16 sps:$4 sm:$0xff]   ;;  %vm1332_vm0 = vcmask 130048   ;;  %v3051_v11 = vld [vmem:[#allocation5 + $0x44] ss:$16 sps:$4 sm:$0xff]   ;;  %vm3635_vm1 = vmmov 0  }
  0x73   :  { %1500 = vmatprep.subr.bf16.mxu1 %v3049_v7  ;;  %v3053_v12 = vld [vmem:[#allocation5 + $0x28] ss:$16 sps:$4 sm:$0xff]   ;;  %v3055_v13 = vld [vmem:[#allocation5 + $0x2c] ss:$16 sps:$4 sm:$0xff]   ;;  %v3056_v14 = vld [vmem:[#allocation5 + $0x40] ss:$16 sps:$4 sm:$0xff]  }
  0x74   :  { %v3057_v15 = vld [vmem:[#allocation5 + $0x64] ss:$16 sps:$4 sm:$0xff]   ;;  %v3061_v16 = vld [vmem:[#allocation5 + $0x4c] ss:$16 sps:$4 sm:$0xff]   ;;  %v3062_v17 = vld [vmem:[#allocation5 + $0x60] ss:$16 sps:$4 sm:$0xff]  }
  0x75   :  { %1339 = vmatpush1.bf16.msra.mxu0 %v3050_v8  ;;  %2812 = vmatmul.mubr.msk.bf16.vlgmr.msra.gmra.mrb[0].mxu1 %vm1332_vm0, %v3780_v10  ;;  %v3059_v18 = vld [vmem:[#allocation5 + $0x48] ss:$16 sps:$4 sm:$0xff]   ;;  %v3063_v19 = vld [vmem:[#allocation5 + $0x84] ss:$16 sps:$4 sm:$0xff]   ;;  %v3067_v20 = vld [vmem:[#allocation5 + $0x6c] ss:$16 sps:$4 sm:$0xff]  }
  0x76   :  { %1501 = vmatpush1.bf16.msra.mxu1 %v3047_v6  ;;  %1340 = vmatprep.subr.bf16.mxu0 %v3051_v11  ;;  %v3065_v21 = vld [vmem:[#allocation5 + $0x68] ss:$16 sps:$4 sm:$0xff]   ;;  %v3068_v22 = vld [vmem:[#allocation5 + $0x80] ss:$16 sps:$4 sm:$0xff]   ;;  %v3069_v23 = vld [vmem:[#allocation5 + $0xa4] ss:$16 sps:$4 sm:$0xff]  }
  0x77   :  { %1502 = vmatprep.subr.bf16.mxu1 %v3055_v13  ;;  %v3073_v24 = vld [vmem:[#allocation5 + $0x8c] ss:$16 sps:$4 sm:$0xff]   ;;  %v3074_v25 = vld [vmem:[#allocation5 + $0xa0] ss:$16 sps:$4 sm:$0xff]   ;;  %v3071_v26 = vld [vmem:[#allocation5 + $0x88] ss:$16 sps:$4 sm:$0xff]  }
  0x78   :  { %v3075_v27 = vld [vmem:[#allocation5 + $0xc4] ss:$16 sps:$4 sm:$0xff]   ;;  %v3079_v28 = vld [vmem:[#allocation5 + $0xac] ss:$16 sps:$4 sm:$0xff]   ;;  %v3077_v29 = vld [vmem:[#allocation5 + $0xa8] ss:$16 sps:$4 sm:$0xff]  }
  0x79   :  { %1341 = vmatpush1.bf16.msra.mxu0 %v3056_v14  ;;  %v3080_v30 = vld [vmem:[#allocation5 + $0xc0] ss:$16 sps:$4 sm:$0xff]   ;;  %v3081_v31 = vld [vmem:[#allocation5 + $0xe4] ss:$16 sps:$4 sm:$0xff]   ;;  %v3085_v32 = vld [vmem:[#allocation5 + $0xcc] ss:$16 sps:$4 sm:$0xff]  }
  0x7a   :  { %1503 = vmatpush1.bf16.msra.mxu1 %v3053_v12  ;;  %1342 = vmatprep.subr.bf16.mxu0 %v3057_v15  ;;  %v3086_v33 = vld [vmem:[#allocation5 + $0xe0] ss:$16 sps:$4 sm:$0xff]   ;;  %v3083_v34 = vld [vmem:[#allocation5 + $0xc8] ss:$16 sps:$4 sm:$0xff]   ;;  %v3087_v35 = vld [vmem:[#allocation5 + $0x104] ss:$16 sps:$4 sm:$0xff]  }
  0x7b   :  { %1504 = vmatprep.subr.bf16.mxu1 %v3061_v16  ;;  %v3091_v36 = vld [vmem:[#allocation5 + $0xec] ss:$16 sps:$4 sm:$0xff]   ;;  %v3089_v37 = vld [vmem:[#allocation5 + $0xe8] ss:$16 sps:$4 sm:$0xff]   ;;  %v3092_v38 = vld [vmem:[#allocation5 + $0x100] ss:$16 sps:$4 sm:$0xff]  }
  0x7c   :  { %v3093_v39 = vld [vmem:[#allocation5 + $0x124] ss:$16 sps:$4 sm:$0xff]   ;;  %v3097_v40 = vld [vmem:[#allocation5 + $0x10c] ss:$16 sps:$4 sm:$0xff]   ;;  %v3098_v41 = vld [vmem:[#allocation5 + $0x120] ss:$16 sps:$4 sm:$0xff]  }
  0x7d   :  { %1343 = vmatpush1.bf16.msra.mxu0 %v3062_v17  ;;  %v3095_v42 = vld [vmem:[#allocation5 + $0x108] ss:$16 sps:$4 sm:$0xff]   ;;  %v3099_v43 = vld [vmem:[#allocation5 + $0x144] ss:$16 sps:$4 sm:$0xff]   ;;  %v3103_v44 = vld [vmem:[#allocation5 + $0x12c] ss:$16 sps:$4 sm:$0xff]  }
  0x7e   :  { %1505 = vmatpush1.bf16.msra.mxu1 %v3059_v18  ;;  %1344 = vmatprep.subr.bf16.mxu0 %v3063_v19  ;;  %v3101_v45 = vld [vmem:[#allocation5 + $0x128] ss:$16 sps:$4 sm:$0xff]   ;;  %v3104_v46 = vld [vmem:[#allocation5 + $0x140] ss:$16 sps:$4 sm:$0xff]   ;;  %v3105_v47 = vld [vmem:[#allocation5 + $0x164] ss:$16 sps:$4 sm:$0xff]  }
  0x7f   :  { %1506 = vmatprep.subr.bf16.mxu1 %v3067_v20  ;;  %v3109_v48 = vld [vmem:[#allocation5 + $0x14c] ss:$16 sps:$4 sm:$0xff]   ;;  %v121_v49 = vld [vmem:[#allocation2 + $0x8] sm:$0xff]  ;;  %v3107_v52 = vld [vmem:[#allocation5 + $0x148] ss:$16 sps:$4 sm:$0xff]   ;;  %vm2483_vm2 = vcmask 523264  }
  0x80   :  { %v3110_v50 = vld [vmem:[#allocation5 + $0x160] ss:$16 sps:$4 sm:$0xff]   ;;  %v128_v51 = vpack.c.bf16 %v121_v49, %v121_v49  ;;  %v3111_v53 = vld [vmem:[#allocation5 + $0x184] ss:$16 sps:$4 sm:$0xff]   ;;  %v3115_v54 = vld [vmem:[#allocation5 + $0x16c] ss:$16 sps:$4 sm:$0xff]  }
  0x81   :  { %1345 = vmatpush1.bf16.msra.mxu0 %v3068_v22  ;;  %v3113_v55 = vld [vmem:[#allocation5 + $0x168] ss:$16 sps:$4 sm:$0xff]   ;;  %v3116_v56 = vld [vmem:[#allocation5 + $0x180] ss:$16 sps:$4 sm:$0xff]   ;;  %v3117_v57 = vld [vmem:[#allocation5 + $0x1a4] ss:$16 sps:$4 sm:$0xff]  }
  0x82   :  { %1507 = vmatpush1.bf16.msra.mxu1 %v3065_v21  ;;  %1346 = vmatprep.subr.bf16.mxu0 %v3069_v23  ;;  %v3121_v58 = vld [vmem:[#allocation5 + $0x18c] ss:$16 sps:$4 sm:$0xff]   ;;  %v3119_v59 = vld [vmem:[#allocation5 + $0x188] ss:$16 sps:$4 sm:$0xff]   ;;  %v3122_v60 = vld [vmem:[#allocation5 + $0x1a0] ss:$16 sps:$4 sm:$0xff]  }
  0x83   :  { %1508 = vmatprep.subr.bf16.mxu1 %v3073_v24  ;;  %1368 = vmatprep.mubr.bf16.mxu0 %v128_v51  ;;  %v3123_v61 = vld [vmem:[#allocation5 + $0x1c4] ss:$16 sps:$4 sm:$0xff]   ;;  %v3127_v62 = vld [vmem:[#allocation5 + $0x1ac] ss:$16 sps:$4 sm:$0xff]   ;;  %v3125_v63 = vld [vmem:[#allocation5 + $0x1a8] ss:$16 sps:$4 sm:$0xff]  }
  0x84   :  { %1532 = vmatprep.mubr.bf16.mxu1 %v128_v51  ;;  %v3128_v1 = vld [vmem:[#allocation5 + $0x1c0] ss:$16 sps:$4 sm:$0xff]   ;;  %v3129_v2 = vld [vmem:[#allocation5 + $0x1e4] ss:$16 sps:$4 sm:$0xff]   ;;  %v3133_v3 = vld [vmem:[#allocation5 + $0x1cc] ss:$16 sps:$4 sm:$0xff]  }
  0x85   :  { %1347 = vmatpush1.bf16.msra.mxu0 %v3074_v25  ;;  %v3131_v4 = vld [vmem:[#allocation5 + $0x1c8] ss:$16 sps:$4 sm:$0xff]   ;;  %v3134_v5 = vld [vmem:[#allocation5 + $0x1e0] ss:$16 sps:$4 sm:$0xff]   ;;  %v3137_v7 = vld [vmem:[#allocation5 + $0x204] ss:$16 sps:$4 sm:$0xff]  }
  0x86   :  { %1509 = vmatpush1.bf16.msra.mxu1 %v3071_v26  ;;  %1348 = vmatprep.subr.bf16.mxu0 %v3075_v27  ;;  %v120_v6 = vld [vmem:[#allocation2] sm:$0xff]  ;;  %v3135_v11 = vld [vmem:[#allocation5 + $0x200] ss:$16 sps:$4 sm:$0xff]   ;;  %v3143_v13 = vld [vmem:[#allocation5 + $0x224] ss:$16 sps:$4 sm:$0xff]   ;;  %vm2552_vm3 = vcmask 261120  }
  0x87   :  { %1510 = vmatprep.subr.bf16.mxu1 %v3079_v28  ;;  %v3140_v8 = vld [vmem:[#allocation5 + $0x1ec] ss:$16 sps:$4 sm:$0xff]   ;;  %v127_v9 = vpack.c.bf16 %v120_v6, %v120_v6  ;;  %v3138_v12 = vld [vmem:[#allocation5 + $0x1e8] ss:$16 sps:$4 sm:$0xff]   ;;  %v3141_v15 = vld [vmem:[#allocation5 + $0x220] ss:$16 sps:$4 sm:$0xff]  }
  0x88   :  { %v3146_v14 = vld [vmem:[#allocation5 + $0x20c] ss:$16 sps:$4 sm:$0xff]   ;;  %v3144_v16 = vld [vmem:[#allocation5 + $0x208] ss:$16 sps:$4 sm:$0xff]   ;;  %v3149_v17 = vld [vmem:[#allocation5 + $0x244] ss:$16 sps:$4 sm:$0xff]  }
  0x89   :  { %1349 = vmatpush1.bf16.msra.mxu0 %v3080_v30  ;;  %v3152_v18 = vld [vmem:[#allocation5 + $0x22c] ss:$16 sps:$4 sm:$0xff]   ;;  %v3147_v19 = vld [vmem:[#allocation5 + $0x240] ss:$16 sps:$4 sm:$0xff]   ;;  %v3150_v20 = vld [vmem:[#allocation5 + $0x228] ss:$16 sps:$4 sm:$0xff]  }
  0x8a   :  { %1511 = vmatpush1.bf16.msra.mxu1 %v3077_v29  ;;  %1350 = vmatprep.subr.bf16.mxu0 %v3081_v31  ;;  %v3155_v21 = vld [vmem:[#allocation5 + $0x264] ss:$16 sps:$4 sm:$0xff]   ;;  %v3158_v22 = vld [vmem:[#allocation5 + $0x24c] ss:$16 sps:$4 sm:$0xff]   ;;  %v3153_v23 = vld [vmem:[#allocation5 + $0x260] ss:$16 sps:$4 sm:$0xff]  }
  0x8b   :  { %1512 = vmatprep.subr.bf16.mxu1 %v3085_v32  ;;  %v3156_v24 = vld [vmem:[#allocation5 + $0x248] ss:$16 sps:$4 sm:$0xff]   ;;  %v3161_v25 = vld [vmem:[#allocation5 + $0x284] ss:$16 sps:$4 sm:$0xff]   ;;  %v3164_v26 = vld [vmem:[#allocation5 + $0x26c] ss:$16 sps:$4 sm:$0xff]  }
  0x8c   :  { %v3159_v27 = vld [vmem:[#allocation5 + $0x280] ss:$16 sps:$4 sm:$0xff]   ;;  %v3162_v28 = vld [vmem:[#allocation5 + $0x268] ss:$16 sps:$4 sm:$0xff]   ;;  %v3167_v29 = vld [vmem:[#allocation5 + $0x2a4] ss:$16 sps:$4 sm:$0xff]  }
  0x8d   :  { %1351 = vmatpush1.bf16.msra.mxu0 %v3086_v33  ;;  %v3170_v30 = vld [vmem:[#allocation5 + $0x28c] ss:$16 sps:$4 sm:$0xff]   ;;  %v3165_v31 = vld [vmem:[#allocation5 + $0x2a0] ss:$16 sps:$4 sm:$0xff]   ;;  %v3168_v32 = vld [vmem:[#allocation5 + $0x288] ss:$16 sps:$4 sm:$0xff]  }
  0x8e   :  { %1513 = vmatpush1.bf16.msra.mxu1 %v3083_v34  ;;  %1352 = vmatprep.subr.bf16.mxu0 %v3087_v35  ;;  %v3173_v33 = vld [vmem:[#allocation5 + $0x2c4] ss:$16 sps:$4 sm:$0xff]   ;;  %v3176_v34 = vld [vmem:[#allocation5 + $0x2ac] ss:$16 sps:$4 sm:$0xff]   ;;  %v3189_v49 = vld [vmem:[#allocation5 + $0x320] ss:$16 sps:$4 sm:$0xff]  }
  0x8f   :  { %1514 = vmatprep.subr.bf16.mxu1 %v3091_v36  ;;  %v123_v35 = vld [vmem:[#allocation2 + $0x18] sm:$0xff] }
  0x90   :  { %v130_v36 = vpack.c.bf16 %v123_v35, %v123_v35  ;;  %v3197_v51 = vld [vmem:[#allocation5 + $0x344] ss:$16 sps:$4 sm:$0xff]   ;;  %v3219_v6 = vld [vmem:[#allocation5 + $0x3c0] ss:$16 sps:$4 sm:$0xff]  }
  0x91   :  { %1353 = vmatpush1.bf16.msra.mxu0 %v3092_v38  ;;  %v3174_v38 = vld [vmem:[#allocation5 + $0x2a8] ss:$16 sps:$4 sm:$0xff]   ;;  %v3255_v35 = vld [vmem:[#allocation5 + $0x480] ss:$16 sps:$4 sm:$0xff]  }
  0x92   :  { %1515 = vmatpush1.bf16.msra.mxu1 %v3089_v37  ;;  %1354 = vmatprep.subr.bf16.mxu0 %v3093_v39  ;;  %v3171_v37 = vld [vmem:[#allocation5 + $0x2c0] ss:$16 sps:$4 sm:$0xff]   ;;  %v3179_v39 = vld [vmem:[#allocation5 + $0x2e4] ss:$16 sps:$4 sm:$0xff]  }
  0x93   :  { %1516 = vmatprep.subr.bf16.mxu1 %v3097_v40  ;;  %v3182_v40 = vld [vmem:[#allocation5 + $0x2cc] ss:$16 sps:$4 sm:$0xff]  }
  0x95   :  { %1355 = vmatpush1.bf16.msra.mxu0 %v3098_v41  ;;  %v3177_v41 = vld [vmem:[#allocation5 + $0x2e0] ss:$16 sps:$4 sm:$0xff]  }
  0x96   :  { %1517 = vmatpush1.bf16.msra.mxu1 %v3095_v42  ;;  %1356 = vmatprep.subr.bf16.mxu0 %v3099_v43  ;;  %v3180_v42 = vld [vmem:[#allocation5 + $0x2c8] ss:$16 sps:$4 sm:$0xff]   ;;  %v3185_v43 = vld [vmem:[#allocation5 + $0x304] ss:$16 sps:$4 sm:$0xff]  }
  0x97   :  { %1518 = vmatprep.subr.bf16.mxu1 %v3103_v44  ;;  %v3188_v44 = vld [vmem:[#allocation5 + $0x2ec] ss:$16 sps:$4 sm:$0xff]  }
  0x99   :  { %1357 = vmatpush1.bf16.msra.mxu0 %v3104_v46  ;;  %v3186_v46 = vld [vmem:[#allocation5 + $0x2e8] ss:$16 sps:$4 sm:$0xff]  }
  0x9a   :  { %1519 = vmatpush1.bf16.msra.mxu1 %v3101_v45  ;;  %1358 = vmatprep.subr.bf16.mxu0 %v3105_v47  ;;  %v3183_v45 = vld [vmem:[#allocation5 + $0x300] ss:$16 sps:$4 sm:$0xff]   ;;  %v3191_v47 = vld [vmem:[#allocation5 + $0x324] ss:$16 sps:$4 sm:$0xff]  }
  0x9b   :  { %1520 = vmatprep.subr.bf16.mxu1 %v3109_v48  ;;  %v3194_v48 = vld [vmem:[#allocation5 + $0x30c] ss:$16 sps:$4 sm:$0xff]  }
  0x9d   :  { %1359 = vmatpush1.bf16.msra.mxu0 %v3110_v50  ;;  %v3192_v50 = vld [vmem:[#allocation5 + $0x308] ss:$16 sps:$4 sm:$0xff]  }
  0x9e   :  { %1521 = vmatpush1.bf16.msra.mxu1 %v3107_v52  ;;  %1360 = vmatprep.subr.bf16.mxu0 %v3111_v53  ;;  %v3200_v52 = vld [vmem:[#allocation5 + $0x32c] ss:$16 sps:$4 sm:$0xff]   ;;  %v3195_v53 = vld [vmem:[#allocation5 + $0x340] ss:$16 sps:$4 sm:$0xff]  }
  0x9f   :  { %1522 = vmatprep.subr.bf16.mxu1 %v3115_v54  ;;  %v3198_v54 = vld [vmem:[#allocation5 + $0x328] ss:$16 sps:$4 sm:$0xff]  }
  0xa1   :  { %1361 = vmatpush1.bf16.msra.mxu0 %v3116_v56  ;;  %v3206_v56 = vld [vmem:[#allocation5 + $0x34c] ss:$16 sps:$4 sm:$0xff]  }
  0xa2   :  { %1523 = vmatpush1.bf16.msra.mxu1 %v3113_v55  ;;  %1362 = vmatprep.subr.bf16.mxu0 %v3117_v57  ;;  %v3203_v55 = vld [vmem:[#allocation5 + $0x364] ss:$16 sps:$4 sm:$0xff]   ;;  %v3201_v57 = vld [vmem:[#allocation5 + $0x360] ss:$16 sps:$4 sm:$0xff]  }
  0xa3   :  { %1524 = vmatprep.subr.bf16.mxu1 %v3121_v58  ;;  %v3204_v58 = vld [vmem:[#allocation5 + $0x348] ss:$16 sps:$4 sm:$0xff]  }
  0xa5   :  { %1363 = vmatpush1.bf16.msra.mxu0 %v3122_v60  ;;  %v3212_v60 = vld [vmem:[#allocation5 + $0x36c] ss:$16 sps:$4 sm:$0xff]  }
  0xa6   :  { %1525 = vmatpush1.bf16.msra.mxu1 %v3119_v59  ;;  %1364 = vmatprep.subr.bf16.mxu0 %v3123_v61  ;;  %v3209_v59 = vld [vmem:[#allocation5 + $0x384] ss:$16 sps:$4 sm:$0xff]   ;;  %v3207_v61 = vld [vmem:[#allocation5 + $0x380] ss:$16 sps:$4 sm:$0xff]  }
  0xa7   :  { %1526 = vmatprep.subr.bf16.mxu1 %v3127_v62  ;;  %v3210_v62 = vld [vmem:[#allocation5 + $0x368] ss:$16 sps:$4 sm:$0xff]  }
  0xa9   :  { %1365 = vmatpush1.bf16.msra.mxu0 %v3128_v1  ;;  %v3218_v1 = vld [vmem:[#allocation5 + $0x38c] ss:$16 sps:$4 sm:$0xff]  }
  0xaa   :  { %1527 = vmatpush1.bf16.msra.mxu1 %v3125_v63  ;;  %1366 = vmatprep.subr.bf16.mxu0 %v3129_v2  ;;  %v3215_v63 = vld [vmem:[#allocation5 + $0x3a4] ss:$16 sps:$4 sm:$0xff]   ;;  %v3213_v2 = vld [vmem:[#allocation5 + $0x3a0] ss:$16 sps:$4 sm:$0xff]  }
  0xab   :  { %1528 = vmatprep.subr.bf16.mxu1 %v3133_v3  ;;  %v3216_v3 = vld [vmem:[#allocation5 + $0x388] ss:$16 sps:$4 sm:$0xff]  }
  0xad   :  { %1367 = vmatpush1.bf16.msra.mxu0 %v3134_v5  ;;  %v3224_v5 = vld [vmem:[#allocation5 + $0x3ac] ss:$16 sps:$4 sm:$0xff]  }
  0xae   :  { %1529 = vmatpush1.bf16.msra.mxu1 %v3131_v4  ;;  %1377 = vmatprep.subr.bf16.mxu0 %v3137_v7  ;;  %v3221_v4 = vld [vmem:[#allocation5 + $0x3c4] ss:$16 sps:$4 sm:$0xff]   ;;  %v3222_v7 = vld [vmem:[#allocation5 + $0x3a8] ss:$16 sps:$4 sm:$0xff]  }
  0xaf   :  { %1530 = vmatprep.subr.bf16.mxu1 %v3140_v8  ;;  %v3227_v8 = vld [vmem:[#allocation5 + $0x3e4] ss:$16 sps:$4 sm:$0xff]  }
  0xb0   :  { %1369 = vmatmul.mubr.bf16.vlgmr.msra.gmra.mrb[0].mxu0 %v127_v9 }
  0xb1   :  { %1378 = vmatpush1.bf16.msra.mxu0 %v3135_v11  ;;  %1409 = vmatprep.mubr.bf16.mxu0 %v130_v36  ;;  %v3225_v11 = vld [vmem:[#allocation5 + $0x3e0] ss:$16 sps:$4 sm:$0xff]  }
  0xb2   :  { %1531 = vmatpush1.bf16.msra.mxu1 %v3138_v12  ;;  %1379 = vmatprep.subr.bf16.mxu0 %v3143_v13  ;;  %v122_v12 = vld [vmem:[#allocation2 + $0x10] sm:$0xff] }
  0xb3   :  { %1541 = vmatprep.subr.bf16.mxu1 %v3146_v14  ;;  %v3228_v13 = vld [vmem:[#allocation5 + $0x3c8] ss:$16 sps:$4 sm:$0xff]   ;;  %v3233_v14 = vld [vmem:[#allocation5 + $0x404] ss:$16 sps:$4 sm:$0xff]  }
  0xb5   :  { %1380 = vmatpush1.bf16.msra.mxu0 %v3141_v15  ;;  %1533 = vmatmul.mubr.bf16.vlgmr.msra.gmra.mrb[4].mxu1 %v127_v9  ;;  %v3230_v9 = vld [vmem:[#allocation5 + $0x3cc] ss:$16 sps:$4 sm:$0xff]  }
  0xb6   :  { %1542 = vmatpush1.bf16.msra.mxu1 %v3144_v16  ;;  %1381 = vmatprep.subr.bf16.mxu0 %v3149_v17  ;;  %v3236_v15 = vld [vmem:[#allocation5 + $0x3ec] ss:$16 sps:$4 sm:$0xff]   ;;  %v129_v16 = vpack.c.bf16 %v122_v12, %v122_v12  ;;  %v3231_v17 = vld [vmem:[#allocation5 + $0x400] ss:$16 sps:$4 sm:$0xff]  }
  0xb7   :  { %1543 = vmatprep.subr.bf16.mxu1 %v3152_v18  ;;  %1573 = vmatprep.mubr.bf16.mxu1 %v130_v36  ;;  %v3234_v18 = vld [vmem:[#allocation5 + $0x3e8] ss:$16 sps:$4 sm:$0xff]   ;;  %v3320_v12 = vld [vmem:[#allocation5 + $0x5ac] ss:$16 sps:$4 sm:$0xff]  }
  0xb8   :  { %v3258_v36 = vld [vmem:[#allocation5 + $0x468] ss:$16 sps:$4 sm:$0xff]  }
  0xb9   :  { %1382 = vmatpush1.bf16.msra.mxu0 %v3147_v19  ;;  %v3239_v19 = vld [vmem:[#allocation5 + $0x424] ss:$16 sps:$4 sm:$0xff]  }
  0xba   :  { %1544 = vmatpush1.bf16.msra.mxu1 %v3150_v20  ;;  %1383 = vmatprep.subr.bf16.mxu0 %v3155_v21  ;;  %v125_v20 = vld [vmem:[#allocation2 + $0x28] sm:$0xff]  ;;  %v3242_v21 = vld [vmem:[#allocation5 + $0x40c] ss:$16 sps:$4 sm:$0xff]  }
  0xbb   :  { %1545 = vmatprep.subr.bf16.mxu1 %v3158_v22  ;;  %v132_v22 = vpack.c.bf16 %v125_v20, %v125_v20  ;;  %v3335_v20 = vld [vmem:[#allocation8 + $0x4] ss:$8 sps:$4 sm:$0xff]  }
  0xbd   :  { %1384 = vmatpush1.bf16.msra.mxu0 %v3153_v23  ;;  %v3237_v23 = vld [vmem:[#allocation5 + $0x420] ss:$16 sps:$4 sm:$0xff]  }
  0xbe   :  { %1546 = vmatpush1.bf16.msra.mxu1 %v3156_v24  ;;  %1385 = vmatprep.subr.bf16.mxu0 %v3161_v25  ;;  %v3240_v24 = vld [vmem:[#allocation5 + $0x408] ss:$16 sps:$4 sm:$0xff]   ;;  %v3245_v25 = vld [vmem:[#allocation5 + $0x444] ss:$16 sps:$4 sm:$0xff]  }
  0xbf   :  { %1547 = vmatprep.subr.bf16.mxu1 %v3164_v26  ;;  %v3248_v26 = vld [vmem:[#allocation5 + $0x42c] ss:$16 sps:$4 sm:$0xff]  }
  0xc1   :  { %1386 = vmatpush1.bf16.msra.mxu0 %v3159_v27  ;;  %v3243_v27 = vld [vmem:[#allocation5 + $0x440] ss:$16 sps:$4 sm:$0xff]  }
  0xc2   :  { %1548 = vmatpush1.bf16.msra.mxu1 %v3162_v28  ;;  %1387 = vmatprep.subr.bf16.mxu0 %v3167_v29  ;;  %v3246_v28 = vld [vmem:[#allocation5 + $0x428] ss:$16 sps:$4 sm:$0xff]   ;;  %v3251_v29 = vld [vmem:[#allocation5 + $0x464] ss:$16 sps:$4 sm:$0xff]  }
  0xc3   :  { %1549 = vmatprep.subr.bf16.mxu1 %v3170_v30  ;;  %v3254_v30 = vld [vmem:[#allocation5 + $0x44c] ss:$16 sps:$4 sm:$0xff]  }
  0xc5   :  { %1388 = vmatpush1.bf16.msra.mxu0 %v3165_v31  ;;  %v3249_v31 = vld [vmem:[#allocation5 + $0x460] ss:$16 sps:$4 sm:$0xff]  }
  0xc6   :  { %1550 = vmatpush1.bf16.msra.mxu1 %v3168_v32  ;;  %1389 = vmatprep.subr.bf16.mxu0 %v3173_v33  ;;  %v3252_v32 = vld [vmem:[#allocation5 + $0x448] ss:$16 sps:$4 sm:$0xff]   ;;  %v3257_v33 = vld [vmem:[#allocation5 + $0x484] ss:$16 sps:$4 sm:$0xff]  }
  0xc7   :  { %1551 = vmatprep.subr.bf16.mxu1 %v3176_v34  ;;  %v3260_v34 = vld [vmem:[#allocation5 + $0x46c] ss:$16 sps:$4 sm:$0xff]  }
  0xc9   :  { %1390 = vmatpush1.bf16.msra.mxu0 %v3171_v37  ;;  %v3263_v37 = vld [vmem:[#allocation5 + $0x4a4] ss:$16 sps:$4 sm:$0xff]  }
  0xca   :  { %1552 = vmatpush1.bf16.msra.mxu1 %v3174_v38  ;;  %1391 = vmatprep.subr.bf16.mxu0 %v3179_v39  ;;  %v3266_v38 = vld [vmem:[#allocation5 + $0x48c] ss:$16 sps:$4 sm:$0xff]   ;;  %v3261_v39 = vld [vmem:[#allocation5 + $0x4a0] ss:$16 sps:$4 sm:$0xff]  }
  0xcb   :  { %1553 = vmatprep.subr.bf16.mxu1 %v3182_v40  ;;  %v3264_v40 = vld [vmem:[#allocation5 + $0x488] ss:$16 sps:$4 sm:$0xff]  }
  0xcd   :  { %1392 = vmatpush1.bf16.msra.mxu0 %v3177_v41  ;;  %v3269_v41 = vld [vmem:[#allocation5 + $0x4c4] ss:$16 sps:$4 sm:$0xff]  }
  0xce   :  { %1554 = vmatpush1.bf16.msra.mxu1 %v3180_v42  ;;  %1393 = vmatprep.subr.bf16.mxu0 %v3185_v43  ;;  %v3272_v42 = vld [vmem:[#allocation5 + $0x4ac] ss:$16 sps:$4 sm:$0xff]   ;;  %v3267_v43 = vld [vmem:[#allocation5 + $0x4c0] ss:$16 sps:$4 sm:$0xff]  }
  0xcf   :  { %1555 = vmatprep.subr.bf16.mxu1 %v3188_v44  ;;  %v3270_v44 = vld [vmem:[#allocation5 + $0x4a8] ss:$16 sps:$4 sm:$0xff]  }
  0xd1   :  { %1394 = vmatpush1.bf16.msra.mxu0 %v3183_v45  ;;  %v3275_v45 = vld [vmem:[#allocation5 + $0x4e4] ss:$16 sps:$4 sm:$0xff]  }
  0xd2   :  { %1556 = vmatpush1.bf16.msra.mxu1 %v3186_v46  ;;  %1395 = vmatprep.subr.bf16.mxu0 %v3191_v47  ;;  %v3278_v46 = vld [vmem:[#allocation5 + $0x4cc] ss:$16 sps:$4 sm:$0xff]   ;;  %v3273_v47 = vld [vmem:[#allocation5 + $0x4e0] ss:$16 sps:$4 sm:$0xff]  }
  0xd3   :  { %1557 = vmatprep.subr.bf16.mxu1 %v3194_v48  ;;  %v3276_v48 = vld [vmem:[#allocation5 + $0x4c8] ss:$16 sps:$4 sm:$0xff]  }
  0xd5   :  { %1396 = vmatpush1.bf16.msra.mxu0 %v3189_v49  ;;  %v3281_v49 = vld [vmem:[#allocation5 + $0x504] ss:$16 sps:$4 sm:$0xff]  }
  0xd6   :  { %1558 = vmatpush1.bf16.msra.mxu1 %v3192_v50  ;;  %1397 = vmatprep.subr.bf16.mxu0 %v3197_v51  ;;  %v3284_v50 = vld [vmem:[#allocation5 + $0x4ec] ss:$16 sps:$4 sm:$0xff]   ;;  %v3279_v51 = vld [vmem:[#allocation5 + $0x500] ss:$16 sps:$4 sm:$0xff]  }
  0xd7   :  { %1559 = vmatprep.subr.bf16.mxu1 %v3200_v52  ;;  %v3282_v52 = vld [vmem:[#allocation5 + $0x4e8] ss:$16 sps:$4 sm:$0xff]  }
  0xd9   :  { %1398 = vmatpush1.bf16.msra.mxu0 %v3195_v53  ;;  %v3287_v53 = vld [vmem:[#allocation5 + $0x524] ss:$16 sps:$4 sm:$0xff]  }
  0xda   :  { %1560 = vmatpush1.bf16.msra.mxu1 %v3198_v54  ;;  %1399 = vmatprep.subr.bf16.mxu0 %v3203_v55  ;;  %v3290_v54 = vld [vmem:[#allocation5 + $0x50c] ss:$16 sps:$4 sm:$0xff]   ;;  %v3285_v55 = vld [vmem:[#allocation5 + $0x520] ss:$16 sps:$4 sm:$0xff]  }
  0xdb   :  { %1561 = vmatprep.subr.bf16.mxu1 %v3206_v56  ;;  %v3288_v56 = vld [vmem:[#allocation5 + $0x508] ss:$16 sps:$4 sm:$0xff]  }
  0xdd   :  { %1400 = vmatpush1.bf16.msra.mxu0 %v3201_v57  ;;  %v3293_v57 = vld [vmem:[#allocation5 + $0x544] ss:$16 sps:$4 sm:$0xff]  }
  0xde   :  { %1562 = vmatpush1.bf16.msra.mxu1 %v3204_v58  ;;  %1401 = vmatprep.subr.bf16.mxu0 %v3209_v59  ;;  %v3296_v58 = vld [vmem:[#allocation5 + $0x52c] ss:$16 sps:$4 sm:$0xff]   ;;  %v3291_v59 = vld [vmem:[#allocation5 + $0x540] ss:$16 sps:$4 sm:$0xff]  }
  0xdf   :  { %1563 = vmatprep.subr.bf16.mxu1 %v3212_v60  ;;  %v3294_v60 = vld [vmem:[#allocation5 + $0x528] ss:$16 sps:$4 sm:$0xff]  }
  0xe1   :  { %1402 = vmatpush1.bf16.msra.mxu0 %v3207_v61  ;;  %v3299_v61 = vld [vmem:[#allocation5 + $0x564] ss:$16 sps:$4 sm:$0xff]  }
  0xe2   :  { %1564 = vmatpush1.bf16.msra.mxu1 %v3210_v62  ;;  %1403 = vmatprep.subr.bf16.mxu0 %v3215_v63  ;;  %v3302_v62 = vld [vmem:[#allocation5 + $0x54c] ss:$16 sps:$4 sm:$0xff]   ;;  %v3297_v63 = vld [vmem:[#allocation5 + $0x560] ss:$16 sps:$4 sm:$0xff]  }
  0xe3   :  { %1565 = vmatprep.subr.bf16.mxu1 %v3218_v1  ;;  %v3300_v1 = vld [vmem:[#allocation5 + $0x548] ss:$16 sps:$4 sm:$0xff]  }
  0xe5   :  { %1404 = vmatpush1.bf16.msra.mxu0 %v3213_v2  ;;  %v3305_v2 = vld [vmem:[#allocation5 + $0x584] ss:$16 sps:$4 sm:$0xff]  }
  0xe6   :  { %1566 = vmatpush1.bf16.msra.mxu1 %v3216_v3  ;;  %1405 = vmatprep.subr.bf16.mxu0 %v3221_v4  ;;  %v3308_v3 = vld [vmem:[#allocation5 + $0x56c] ss:$16 sps:$4 sm:$0xff]   ;;  %v3303_v4 = vld [vmem:[#allocation5 + $0x580] ss:$16 sps:$4 sm:$0xff]  }
  0xe7   :  { %1567 = vmatprep.subr.bf16.mxu1 %v3224_v5  ;;  %v3306_v5 = vld [vmem:[#allocation5 + $0x568] ss:$16 sps:$4 sm:$0xff]  }
  0xe9   :  { %1406 = vmatpush1.bf16.msra.mxu0 %v3219_v6  ;;  %v3311_v6 = vld [vmem:[#allocation5 + $0x5a4] ss:$16 sps:$4 sm:$0xff]  }
  0xea   :  { %1568 = vmatpush1.bf16.msra.mxu1 %v3222_v7  ;;  %1407 = vmatprep.subr.bf16.mxu0 %v3227_v8  ;;  %v3314_v7 = vld [vmem:[#allocation5 + $0x58c] ss:$16 sps:$4 sm:$0xff]   ;;  %v3309_v8 = vld [vmem:[#allocation5 + $0x5a0] ss:$16 sps:$4 sm:$0xff]  }
  0xeb   :  { %1569 = vmatprep.subr.bf16.mxu1 %v3230_v9  ;;  %v3312_v9 = vld [vmem:[#allocation5 + $0x588] ss:$16 sps:$4 sm:$0xff]  }
  0xed   :  { %1408 = vmatpush1.bf16.msra.mxu0 %v3225_v11  ;;  %v3317_v11 = vld [vmem:[#allocation5 + $0x5c4] ss:$16 sps:$4 sm:$0xff]  }
  0xee   :  { %1570 = vmatpush1.bf16.msra.mxu1 %v3228_v13  ;;  %1418 = vmatprep.subr.bf16.mxu0 %v3233_v14  ;;  %v3315_v13 = vld [vmem:[#allocation5 + $0x5c0] ss:$16 sps:$4 sm:$0xff]   ;;  %v3318_v14 = vld [vmem:[#allocation5 + $0x5a8] ss:$16 sps:$4 sm:$0xff]  }
  0xef   :  { %1571 = vmatprep.subr.bf16.mxu1 %v3236_v15  ;;  %v3323_v15 = vld [vmem:[#allocation5 + $0x5e4] ss:$16 sps:$4 sm:$0xff]  }
  0xf0   :  { %1410 = vmatmul.mubr.bf16.vlgmr.msra.gmra.mrb[0].mxu0 %v129_v16 }
  0xf1   :  { %1419 = vmatpush1.bf16.msra.mxu0 %v3231_v17  ;;  %1450 = vmatprep.mubr.bf16.mxu0 %v132_v22  ;;  %v3321_v17 = vld [vmem:[#allocation5 + $0x5e0] ss:$16 sps:$4 sm:$0xff]  }
  0xf2   :  { %1572 = vmatpush1.bf16.msra.mxu1 %v3234_v18  ;;  %1420 = vmatprep.subr.bf16.mxu0 %v3239_v19  ;;  %v124_v18 = vld [vmem:[#allocation2 + $0x20] sm:$0xff] }
  0xf3   :  { %1582 = vmatprep.subr.bf16.mxu1 %v3242_v21  ;;  %v3324_v19 = vld [vmem:[#allocation5 + $0x5c8] ss:$16 sps:$4 sm:$0xff]   ;;  %v3329_v21 = vld [vmem:[#allocation5 + $0x5ec] ss:$16 sps:$4 sm:$0xff]  }
  0xf5   :  { %1421 = vmatpush1.bf16.msra.mxu0 %v3237_v23  ;;  %1574 = vmatmul.mubr.bf16.vlgmr.msra.gmra.mrb[4].mxu1 %v129_v16  ;;  %v3326_v16 = vld [vmem:[#allocation5 + $0x5cc] ss:$16 sps:$4 sm:$0xff]  }
  0xf6   :  { %1583 = vmatpush1.bf16.msra.mxu1 %v3240_v24  ;;  %1422 = vmatprep.subr.bf16.mxu0 %v3245_v25  ;;  %v3333_v23 = vld [vmem:[#allocation8] ss:$8 sps:$4 sm:$0xff]   ;;  %v3327_v24 = vld [vmem:[#allocation5 + $0x5e8] ss:$16 sps:$4 sm:$0xff]  }
  0xf7   :  { %1584 = vmatprep.subr.bf16.mxu1 %v3248_v26  ;;  %1614 = vmatprep.mubr.bf16.mxu1 %v132_v22  ;;  %v131_v22 = vpack.c.bf16 %v124_v18, %v124_v18  ;;  %v3338_v25 = vld [vmem:[#allocation8 + $0x14] ss:$8 sps:$4 sm:$0xff]   ;;  %v3332_v26 = vld [vmem:[#allocation5 + $0x60c] ss:$16 sps:$4 sm:$0xff]  }
  0xf9   :  { %1423 = vmatpush1.bf16.msra.mxu0 %v3243_v27  ;;  %v3336_v27 = vld [vmem:[#allocation8 + $0x10] ss:$8 sps:$4 sm:$0xff]  }
  0xfa   :  { %1585 = vmatpush1.bf16.msra.mxu1 %v3246_v28  ;;  %1424 = vmatprep.subr.bf16.mxu0 %v3251_v29  ;;  %v3330_v28 = vld [vmem:[#allocation5 + $0x608] ss:$16 sps:$4 sm:$0xff]  }
  0xfb   :  { %1586 = vmatprep.subr.bf16.mxu1 %v3254_v30  ;;  %v3341_v29 = vld [vmem:[#allocation8 + $0x24] ss:$8 sps:$4 sm:$0xff]   ;;  %v3339_v30 = vld [vmem:[#allocation8 + $0x20] ss:$8 sps:$4 sm:$0xff]  }
  0xfd   :  { %1425 = vmatpush1.bf16.msra.mxu0 %v3249_v31  ;;  %v3344_v31 = vld [vmem:[#allocation8 + $0x34] ss:$8 sps:$4 sm:$0xff]  }
  0xfe   :  { %1587 = vmatpush1.bf16.msra.mxu1 %v3252_v32  ;;  %1426 = vmatprep.subr.bf16.mxu0 %v3257_v33  ;;  %v3342_v32 = vld [vmem:[#allocation8 + $0x30] ss:$8 sps:$4 sm:$0xff]   ;;  %v3347_v33 = vld [vmem:[#allocation8 + $0x44] ss:$8 sps:$4 sm:$0xff]  }
  0xff   :  { %1588 = vmatprep.subr.bf16.mxu1 %v3260_v34  ;;  %v3345_v34 = vld [vmem:[#allocation8 + $0x40] ss:$8 sps:$4 sm:$0xff]  }
 0x101   :  { %1427 = vmatpush1.bf16.msra.mxu0 %v3255_v35  ;;  %v3350_v35 = vld [vmem:[#allocation8 + $0x54] ss:$8 sps:$4 sm:$0xff]  }
 0x102   :  { %1589 = vmatpush1.bf16.msra.mxu1 %v3258_v36  ;;  %1428 = vmatprep.subr.bf16.mxu0 %v3263_v37  ;;  %v3348_v36 = vld [vmem:[#allocation8 + $0x50] ss:$8 sps:$4 sm:$0xff]   ;;  %v3353_v37 = vld [vmem:[#allocation8 + $0x64] ss:$8 sps:$4 sm:$0xff]  }
 0x103   :  { %1590 = vmatprep.subr.bf16.mxu1 %v3266_v38  ;;  %v3351_v38 = vld [vmem:[#allocation8 + $0x60] ss:$8 sps:$4 sm:$0xff]  }
 0x105   :  { %1429 = vmatpush1.bf16.msra.mxu0 %v3261_v39 }
 0x106   :  { %1591 = vmatpush1.bf16.msra.mxu1 %v3264_v40  ;;  %1430 = vmatprep.subr.bf16.mxu0 %v3269_v41  ;;  %v3354_v41 = vld [vmem:[#allocation8 + $0x70] ss:$8 sps:$4 sm:$0xff]  }
 0x107   :  { %1592 = vmatprep.subr.bf16.mxu1 %v3272_v42 }
 0x109   :  { %1431 = vmatpush1.bf16.msra.mxu0 %v3267_v43  ;;  %v3359_v43 = vld [vmem:[#allocation8 + $0x84] ss:$8 sps:$4 sm:$0xff]  }
 0x10a   :  { %1593 = vmatpush1.bf16.msra.mxu1 %v3270_v44  ;;  %1432 = vmatprep.subr.bf16.mxu0 %v3275_v45  ;;  %v3362_v45 = vld [vmem:[#allocation8 + $0x94] ss:$8 sps:$4 sm:$0xff]  }
 0x10b   :  { %1594 = vmatprep.subr.bf16.mxu1 %v3278_v46  ;;  %v3360_v46 = vld [vmem:[#allocation8 + $0x90] ss:$8 sps:$4 sm:$0xff]  }
 0x10d   :  { %1433 = vmatpush1.bf16.msra.mxu0 %v3273_v47  ;;  %v3365_v47 = vld [vmem:[#allocation8 + $0xa4] ss:$8 sps:$4 sm:$0xff]  }
 0x10e   :  { %1595 = vmatpush1.bf16.msra.mxu1 %v3276_v48  ;;  %1434 = vmatprep.subr.bf16.mxu0 %v3281_v49  ;;  %v3363_v48 = vld [vmem:[#allocation8 + $0xa0] ss:$8 sps:$4 sm:$0xff]   ;;  %v3368_v49 = vld [vmem:[#allocation8 + $0xb4] ss:$8 sps:$4 sm:$0xff]  }
 0x10f   :  { %1596 = vmatprep.subr.bf16.mxu1 %v3284_v50  ;;  %v3366_v50 = vld [vmem:[#allocation8 + $0xb0] ss:$8 sps:$4 sm:$0xff]  }
 0x111   :  { %1435 = vmatpush1.bf16.msra.mxu0 %v3279_v51  ;;  %v3371_v51 = vld [vmem:[#allocation8 + $0xc4] ss:$8 sps:$4 sm:$0xff]  }
 0x112   :  { %1597 = vmatpush1.bf16.msra.mxu1 %v3282_v52  ;;  %1436 = vmatprep.subr.bf16.mxu0 %v3287_v53  ;;  %v3369_v52 = vld [vmem:[#allocation8 + $0xc0] ss:$8 sps:$4 sm:$0xff]   ;;  %v3374_v53 = vld [vmem:[#allocation8 + $0xd4] ss:$8 sps:$4 sm:$0xff]  }
 0x113   :  { %1598 = vmatprep.subr.bf16.mxu1 %v3290_v54  ;;  %v3372_v54 = vld [vmem:[#allocation8 + $0xd0] ss:$8 sps:$4 sm:$0xff]  }
 0x115   :  { %1437 = vmatpush1.bf16.msra.mxu0 %v3285_v55  ;;  %v3377_v55 = vld [vmem:[#allocation8 + $0xe4] ss:$8 sps:$4 sm:$0xff]  }
 0x116   :  { %1599 = vmatpush1.bf16.msra.mxu1 %v3288_v56  ;;  %1438 = vmatprep.subr.bf16.mxu0 %v3293_v57  ;;  %v3375_v56 = vld [vmem:[#allocation8 + $0xe0] ss:$8 sps:$4 sm:$0xff]   ;;  %v3380_v57 = vld [vmem:[#allocation8 + $0xf4] ss:$8 sps:$4 sm:$0xff]  }
 0x117   :  { %1600 = vmatprep.subr.bf16.mxu1 %v3296_v58  ;;  %v3378_v58 = vld [vmem:[#allocation8 + $0xf0] ss:$8 sps:$4 sm:$0xff]  }
 0x119   :  { %1439 = vmatpush1.bf16.msra.mxu0 %v3291_v59  ;;  %v3383_v59 = vld [vmem:[#allocation8 + $0x104] ss:$8 sps:$4 sm:$0xff]  }
 0x11a   :  { %1601 = vmatpush1.bf16.msra.mxu1 %v3294_v60  ;;  %1440 = vmatprep.subr.bf16.mxu0 %v3299_v61  ;;  %v3429_v60 = vld [vmem:[%s3949_s5 + $0x40] sm:$0xff]  }
 0x11b   :  { %1602 = vmatprep.subr.bf16.mxu1 %v3302_v62  ;;  %v3430_v61 = vld [vmem:[%s3949_s5] sm:$0xff]   ;;  %v3431_v62 = vld [vmem:[%s3949_s5 + $0x48] sm:$0xff]  }
 0x11d   :  { %1441 = vmatpush1.bf16.msra.mxu0 %v3297_v63  ;;  %v3432_v63 = vld [vmem:[%s3949_s5 + $0x8] sm:$0xff]  }
 0x11e   :  { %1603 = vmatpush1.bf16.msra.mxu1 %v3300_v1  ;;  %1442 = vmatprep.subr.bf16.mxu0 %v3305_v2  ;;  %v3433_v1 = vld [vmem:[%s3949_s5 + $0x50] sm:$0xff]  }
 0x11f   :  { %1604 = vmatprep.subr.bf16.mxu1 %v3308_v3  ;;  %v3434_v2 = vld [vmem:[%s3949_s5 + $0x10] sm:$0xff]   ;;  %v3435_v3 = vld [vmem:[%s3949_s5 + $0x58] sm:$0xff]  }
 0x121   :  { %1443 = vmatpush1.bf16.msra.mxu0 %v3303_v4  ;;  %v3436_v4 = vld [vmem:[%s3949_s5 + $0x18] sm:$0xff]  }
 0x122   :  { %1605 = vmatpush1.bf16.msra.mxu1 %v3306_v5  ;;  %1444 = vmatprep.subr.bf16.mxu0 %v3311_v6  ;;  %v3437_v5 = vld [vmem:[%s3949_s5 + $0x60] sm:$0xff]  }
 0x123   :  { %1606 = vmatprep.subr.bf16.mxu1 %v3314_v7  ;;  %v3438_v6 = vld [vmem:[%s3949_s5 + $0x20] sm:$0xff]   ;;  %v3439_v7 = vld [vmem:[%s3949_s5 + $0x68] sm:$0xff]  }
 0x125   :  { %1445 = vmatpush1.bf16.msra.mxu0 %v3309_v8  ;;  %v3440_v8 = vld [vmem:[%s3949_s5 + $0x28] sm:$0xff]  }
 0x126   :  { %1607 = vmatpush1.bf16.msra.mxu1 %v3312_v9  ;;  %1446 = vmatprep.subr.bf16.mxu0 %v3317_v11  ;;  %v332_v9 = vlaneseq }
 0x127   :  { %1608 = vmatprep.subr.bf16.mxu1 %v3320_v12 }
 0x128   :  { %v3827_v11 = vshrl.u32 %v332_v9, 7  ;;  %v3441_v9 = vld [vmem:[%s3949_s5 + $0x70] sm:$0xff]  }
 0x129   :  { %1447 = vmatpush1.bf16.msra.mxu0 %v3315_v13  ;;  %v3830_v13 = vld [vmem:[#allocation7] sm:$0xf] }
 0x12a   :  { %1609 = vmatpush1.bf16.msra.mxu1 %v3318_v14  ;;  %1448 = vmatprep.subr.bf16.mxu0 %v3323_v15  ;;  %v334_v12 = vsub.s32 0, %v3827_v11  ;;  %v338_v14 = vsub.s32 1, %v3827_v11 }
 0x12b   :  { %1610 = vmatprep.subr.bf16.mxu1 %v3326_v16 }
 0x12c   :  { %v335_v15 = vrot.slane %v3830_v13, %v334_v12  ;;  %v339_v16 = vrot.slane %v3830_v13, %v338_v14 }
 0x12d   :  { %1449 = vmatpush1.bf16.msra.mxu0 %v3321_v17 }
 0x12e   :  { %1611 = vmatpush1.bf16.msra.mxu1 %v3324_v19  ;;  %2068 = vmatprep.subr.bf16.mxu0 %v3335_v20 }
 0x12f   :  { %1612 = vmatprep.subr.bf16.mxu1 %v3329_v21 }
 0x130   :  { %1451 = vmatmul.mubr.bf16.vlgmr.msra.gmra.mrb[0].mxu0 %v131_v22 }
 0x131   :  { %2069 = vmatpush1.bf16.msra.mxu0 %v3333_v23 }
 0x132   :  { %1613 = vmatpush1.bf16.msra.mxu1 %v3327_v24  ;;  %2070 = vmatprep.subr.bf16.mxu0 %v3338_v25 }
 0x133   :  { %1623 = vmatprep.subr.bf16.mxu1 %v3332_v26 }
 0x135   :  { %1615 = vmatmul.mubr.bf16.vlgmr.msra.gmra.mrb[4].mxu1 %v131_v22  ;;  %2071 = vmatpush1.bf16.msra.mxu0 %v3336_v27 }
 0x136   :  { %1624 = vmatpush1.bf16.msra.mxu1 %v3330_v28  ;;  %1655 = vmatprep.mubr.bf16.mxu1 %v3633_v0  ;;  %v3356_v0 = vld [vmem:[#allocation8 + $0x74] ss:$8 sps:$4 sm:$0xff]   ;;  %v3381_v28 = vld [vmem:[#allocation8 + $0x100] ss:$8 sps:$4 sm:$0xff]  }
 0x137   :  { %2072 = vmatprep.subr.bf16.mxu0 %v3341_v29  ;;  %2914 = vmatprep.subr.bf16.mxu1 %v3429_v60  ;;  %v3417_v60 = vld [vmem:[#allocation8 + $0x1c0] ss:$8 sps:$4 sm:$0xff]  }
 0x139   :  { %2073 = vmatpush1.bf16.msra.mxu0 %v3339_v30  ;;  %v3386_v30 = vld [vmem:[#allocation8 + $0x114] ss:$8 sps:$4 sm:$0xff]  }
 0x13a   :  { %2074 = vmatprep.subr.bf16.mxu0 %v3344_v31  ;;  %v346_v31 = vsub.s32 3, %v3827_v11 }
 0x13d   :  { %2075 = vmatpush1.bf16.msra.mxu0 %v3342_v32  ;;  %v3384_v32 = vld [vmem:[#allocation8 + $0x110] ss:$8 sps:$4 sm:$0xff]  }
 0x13e   :  { %2076 = vmatprep.subr.bf16.mxu0 %v3347_v33  ;;  %v3389_v33 = vld [vmem:[#allocation8 + $0x124] ss:$8 sps:$4 sm:$0xff]  }
 0x141   :  { %2813 = vmatmul.mubr.msk.bf16.vlgmr.msra.gmra.mrb[4].mxu1 %vm1332_vm0, %v3780_v10  ;;  %2077 = vmatpush1.bf16.msra.mxu0 %v3345_v34  ;;  %v3357_v10 = vld [vmem:[#allocation8 + $0x80] ss:$8 sps:$4 sm:$0xff]   ;;  %v347_v34 = vrot.slane %v3830_v13, %v346_v31 }
 0x142   :  { %2078 = vmatprep.subr.bf16.mxu0 %v3350_v35  ;;  %2915 = vmatpush3.bf16.msra.mxu1 %v3430_v61  ;;  %v3387_v35 = vld [vmem:[#allocation8 + $0x120] ss:$8 sps:$4 sm:$0xff]   ;;  %v342_v61 = vsub.s32 2, %v3827_v11  ;;  %v3446_v11 = vld [vmem:[%s3951_s7 + $0x8] sm:$0xff]  }
 0x143   :  { %2916 = vmatprep.subr.bf16.mxu1 %v3431_v62  ;;  %v3422_v62 = vld [vmem:[#allocation8 + $0x1d4] ss:$8 sps:$4 sm:$0xff]  }
 0x145   :  { %2079 = vmatpush1.bf16.msra.mxu0 %v3348_v36 }
 0x146   :  { %2080 = vmatprep.subr.bf16.mxu0 %v3353_v37  ;;  %2917 = vmatpush3.bf16.msra.mxu1 %v3432_v63  ;;  %v3392_v37 = vld [vmem:[#allocation8 + $0x134] ss:$8 sps:$4 sm:$0xff]   ;;  %v3420_v63 = vld [vmem:[#allocation8 + $0x1d0] ss:$8 sps:$4 sm:$0xff]  }
 0x147   :  { %2918 = vmatprep.subr.bf16.mxu1 %v3433_v1  ;;  %v343_v1 = vrot.slane %v3830_v13, %v342_v61  ;;  %v3442_v13 = vld [vmem:[%s3949_s5 + $0x30] sm:$0xff]  }
 0x148   :  { %v3787_v39 = vpop.f32.mrb[0].mxu1 }
 0x149   :  { %v3789_v40 = vpop.f32.mrb[1].mxu1  ;;  %2081 = vmatpush1.bf16.msra.mxu0 %v3351_v38 }
 0x14a   :  { %v1497_v42 = vpop.f32.mrb[2].mxu1  ;;  %2082 = vmatprep.subr.bf16.mxu0 %v3356_v0  ;;  %2919 = vmatpush3.bf16.msra.mxu1 %v3434_v2  ;;  %v3425_v2 = vld [vmem:[#allocation8 + $0x1e4] ss:$8 sps:$4 sm:$0xff]  }
 0x14b   :  { %v1498_v44 = vpop.f32.mrb[3].mxu1  ;;  %2920 = vmatprep.subr.bf16.mxu1 %v3435_v3  ;;  %v3423_v3 = vld [vmem:[#allocation8 + $0x1e0] ss:$8 sps:$4 sm:$0xff]  }
 0x14d   :  { %2083 = vmatpush1.bf16.msra.mxu0 %v3354_v41  ;;  %v3390_v41 = vld [vmem:[#allocation8 + $0x130] ss:$8 sps:$4 sm:$0xff]  }
 0x14e   :  { %2084 = vmatprep.subr.bf16.mxu0 %v3359_v43  ;;  %2921 = vmatpush3.bf16.msra.mxu1 %v3436_v4  ;;  %v3395_v43 = vld [vmem:[#allocation8 + $0x144] ss:$8 sps:$4 sm:$0xff]  }
 0x14f   :  { %2922 = vmatprep.subr.bf16.mxu1 %v3437_v5  ;;  %v3428_v5 = vld [vmem:[#allocation8 + $0x1f4] ss:$8 sps:$4 sm:$0xff]  }
 0x151   :  { %2085 = vmatpush1.bf16.msra.mxu0 %v3357_v10  ;;  %v3393_v10 = vld [vmem:[#allocation8 + $0x140] ss:$8 sps:$4 sm:$0xff]  }
 0x152   :  { %2086 = vmatprep.subr.bf16.mxu0 %v3362_v45  ;;  %2923 = vmatpush3.bf16.msra.mxu1 %v3438_v6  ;;  %v3398_v45 = vld [vmem:[#allocation8 + $0x154] ss:$8 sps:$4 sm:$0xff]   ;;  %v3426_v6 = vld [vmem:[#allocation8 + $0x1f0] ss:$8 sps:$4 sm:$0xff]  }
 0x153   :  { %2924 = vmatprep.subr.bf16.mxu1 %v3439_v7 }
 0x155   :  { %2087 = vmatpush1.bf16.msra.mxu0 %v3360_v46  ;;  %v3396_v46 = vld [vmem:[#allocation8 + $0x150] ss:$8 sps:$4 sm:$0xff]  }
 0x156   :  { %2088 = vmatprep.subr.bf16.mxu0 %v3365_v47  ;;  %2925 = vmatpush3.bf16.msra.mxu1 %v3440_v8  ;;  %v3401_v47 = vld [vmem:[#allocation8 + $0x164] ss:$8 sps:$4 sm:$0xff]  }
 0x157   :  { %2926 = vmatprep.subr.bf16.mxu1 %v3441_v9 }
 0x159   :  { %2089 = vmatpush1.bf16.msra.mxu0 %v3363_v48  ;;  %v3399_v48 = vld [vmem:[#allocation8 + $0x160] ss:$8 sps:$4 sm:$0xff]  }
 0x15a   :  { %2090 = vmatprep.subr.bf16.mxu0 %v3368_v49  ;;  %v3404_v49 = vld [vmem:[#allocation8 + $0x174] ss:$8 sps:$4 sm:$0xff]   ;;  %2927 = vmatpush3.bf16.msra.mxu1 %v3442_v13 }
 0x15d   :  { %2091 = vmatpush1.bf16.msra.mxu0 %v3366_v50  ;;  %v3402_v50 = vld [vmem:[#allocation8 + $0x170] ss:$8 sps:$4 sm:$0xff]  }
 0x15e   :  { %2092 = vmatprep.subr.bf16.mxu0 %v3371_v51  ;;  %v3407_v51 = vld [vmem:[#allocation8 + $0x184] ss:$8 sps:$4 sm:$0xff]  }
 0x161   :  { %2093 = vmatpush1.bf16.msra.mxu0 %v3369_v52  ;;  %v3405_v52 = vld [vmem:[#allocation8 + $0x180] ss:$8 sps:$4 sm:$0xff]  }
 0x162   :  { %2094 = vmatprep.subr.bf16.mxu0 %v3374_v53  ;;  %v3410_v53 = vld [vmem:[#allocation8 + $0x194] ss:$8 sps:$4 sm:$0xff]  }
 0x165   :  { %2095 = vmatpush1.bf16.msra.mxu0 %v3372_v54  ;;  %v3408_v54 = vld [vmem:[#allocation8 + $0x190] ss:$8 sps:$4 sm:$0xff]  }
 0x166   :  { %2096 = vmatprep.subr.bf16.mxu0 %v3377_v55  ;;  %v3413_v55 = vld [vmem:[#allocation8 + $0x1a4] ss:$8 sps:$4 sm:$0xff]  }
 0x169   :  { %2097 = vmatpush1.bf16.msra.mxu0 %v3375_v56  ;;  %v3411_v56 = vld [vmem:[#allocation8 + $0x1a0] ss:$8 sps:$4 sm:$0xff]  }
 0x16a   :  { %2098 = vmatprep.subr.bf16.mxu0 %v3380_v57  ;;  %v3416_v57 = vld [vmem:[#allocation8 + $0x1b4] ss:$8 sps:$4 sm:$0xff]  }
 0x16d   :  { %2099 = vmatpush1.bf16.msra.mxu0 %v3378_v58  ;;  %v3414_v58 = vld [vmem:[#allocation8 + $0x1b0] ss:$8 sps:$4 sm:$0xff]  }
 0x16e   :  { %2109 = vmatprep.subr.bf16.mxu0 %v3383_v59  ;;  %v3419_v59 = vld [vmem:[#allocation8 + $0x1c4] ss:$8 sps:$4 sm:$0xff]  }
 0x203   :  { %v1452_v17 = vpop.f32.mrb[0].mxu0 }
 0x204   :  { %v2993_v18 = vadd.f32 %v1452_v17, %v335_v15  ;;  %v1454_v19 = vpop.f32.mrb[1].mxu0  ;;  %v3443_v15 = vld [vmem:[%s3949_s5 + $0x78] sm:$0xff]   ;;  %v3634_v17 = vmov 0.0  }
 0x205   :  { %v2995_v20 = vadd.f32 %v1454_v19, %v339_v16  ;;  %v1456_v21 = vpop.f32.mrb[2].mxu0  ;;  %v3444_v16 = vld [vmem:[%s3949_s5 + $0x38] sm:$0xff]   ;;  %2928 = vmatprep.subr.bf16.mxu1 %v3443_v15 }
 0x206   :  { %v2994_v22 = vadd.f32 %v2993_v18, %v3787_v39  ;;  %v1457_v23 = vpop.f32.mrb[3].mxu0  ;;  %2929 = vmatpush3.bf16.msra.mxu1 %v3444_v16  ;;  %v1736_v18 = vld [vmem:[%s3948_s4] sm:$0x3] }
 0x207   :  { %v2996_v24 = vadd.f32 %v2995_v20, %v3789_v40  ;;  %2953 = vmatprep.subr.bf16.mxu1 %v3634_v17  ;;  %v1741_v19 = vrot.slane %v1736_v18, %v334_v12  ;;  %v1745_v20 = vrot.slane %v1736_v18, %v338_v14  ;;  %v3447_v12 = vld [vmem:[%s3951_s7 + $0x10] sm:$0xff]   ;;  %v3448_v14 = vld [vmem:[%s3951_s7 + $0x18] sm:$0xff]  }
 0x208   :  { %v1664_v25 = vmax.f32 %v2994_v22, 0.0 }
 0x209   :  { %v1665_v26 = vmax.f32 %v2996_v24, 0.0 }
 0x20a   :  { %v1668_v29 = vpack.c.bf16 %v1664_v25, %v1664_v25 }
 0x20b   :  { %v1669_v27 = vpack.c.bf16 %v1665_v26, %v1665_v26 }
 0x20d   :  { %2100 = vmatprep.mubr.bf16.mxu0 %v1669_v27 }
 0x20e   :  { %2101 = vmatmul.mubr.bf16.vlgmr.msra.gmra.mrb[4].mxu0 %v1668_v29 }
 0x20f   :  { %2110 = vmatpush1.bf16.msra.mxu0 %v3381_v28 }
 0x210   :  { %2111 = vmatprep.subr.bf16.mxu0 %v3386_v30  ;;  %v3445_v30 = vld [vmem:[%s3951_s7] sm:$0xff]  }
 0x213   :  { %2112 = vmatpush1.bf16.msra.mxu0 %v3384_v32  ;;  %v3449_v32 = vld [vmem:[%s3951_s7 + $0x20] sm:$0xff]  }
 0x214   :  { %v1657_v36 = vpop.f32.mrb[4].mxu1  ;;  %2113 = vmatprep.subr.bf16.mxu0 %v3389_v33  ;;  %v3450_v33 = vld [vmem:[%s3951_s7 + $0x28] sm:$0xff]  }
 0x215   :  { %v1659_v38 = vpop.f32.mrb[5].mxu1  ;;  %v2997_v4 = vadd.f32 %v1657_v36, %v343_v1 }
 0x216   :  { %v2998_v0 = vadd.f32 %v1659_v38, %v347_v34  ;;  %v1661_v39 = vpop.f32.mrb[6].mxu1  ;;  %v3451_v34 = vld [vmem:[%s3951_s7 + $0x30] sm:$0xff]  }
 0x217   :  { %v1662_v40 = vpop.f32.mrb[7].mxu1  ;;  %2114 = vmatpush1.bf16.msra.mxu0 %v3387_v35  ;;  %v1666_v7 = vmax.f32 %v2997_v4, 0.0  ;;  %v3452_v35 = vld [vmem:[%s3951_s7 + $0x38] sm:$0xff]  }
 0x218   :  { %v1667_v42 = vmax.f32 %v2998_v0, 0.0  ;;  %2115 = vmatprep.subr.bf16.mxu0 %v3392_v37  ;;  %v2878_v37 = vld [vmem:[#allocation10] ss:$0 sm:$0xff] }
 0x219   :  { %v1670_v8 = vpack.c.bf16 %v1666_v7, %v1666_v7 }
 0x21a   :  { %v1671_v44 = vpack.c.bf16 %v1667_v42, %v1667_v42 }
 0x21b   :  { %2116 = vmatpush1.bf16.msra.mxu0 %v3390_v41 }
 0x21c   :  { %2141 = vmatprep.mubr.bf16.mxu0 %v1671_v44  ;;  %2117 = vmatprep.subr.bf16.mxu0 %v3395_v43  ;;  %v3453_v43 = vld [vmem:[%s3953_s9] sm:$0xff]  }
 0x21f   :  { %2118 = vmatpush1.bf16.msra.mxu0 %v3393_v10  ;;  %v3454_v10 = vld [vmem:[%s3953_s9 + $0x8] sm:$0xff]  }
 0x220   :  { %2119 = vmatprep.subr.bf16.mxu0 %v3398_v45  ;;  %v3455_v45 = vld [vmem:[%s3953_s9 + $0x10] sm:$0xff]  }
 0x223   :  { %2120 = vmatpush1.bf16.msra.mxu0 %v3396_v46  ;;  %v3456_v46 = vld [vmem:[%s3953_s9 + $0x18] sm:$0xff]  }
 0x224   :  { %2121 = vmatprep.subr.bf16.mxu0 %v3401_v47  ;;  %v2895_v47 = vld [vmem:[#allocation11] ss:$0 sm:$0xff] }
 0x227   :  { %2122 = vmatpush1.bf16.msra.mxu0 %v3399_v48 }
 0x228   :  { %2123 = vmatprep.subr.bf16.mxu0 %v3404_v49 }
 0x22b   :  { %2124 = vmatpush1.bf16.msra.mxu0 %v3402_v50 }
 0x22c   :  { %2125 = vmatprep.subr.bf16.mxu0 %v3407_v51 }
 0x22f   :  { %2126 = vmatpush1.bf16.msra.mxu0 %v3405_v52 }
 0x230   :  { %2127 = vmatprep.subr.bf16.mxu0 %v3410_v53 }
 0x233   :  { %2128 = vmatpush1.bf16.msra.mxu0 %v3408_v54  ;;  %v3457_v54 = vld [vmem:[%s3955_s11] sm:$0xff]  }
 0x234   :  { %2129 = vmatprep.subr.bf16.mxu0 %v3413_v55 }
 0x237   :  { %2130 = vmatpush1.bf16.msra.mxu0 %v3411_v56  ;;  %v3458_v56 = vld [vmem:[%s3955_s11 + $0x8] sm:$0xff]   ;;  %s3636_s11 = smov [#allocation13]  }
 0x238   :  { %2131 = vmatprep.subr.bf16.mxu0 %v3416_v57  ;;  %v2904_v57 = vld [vmem:[%s3954_s10] ss:$0 sm:$0xff]  ;;  %s2604_s20 = sshll.u32 %s3636_s11, 4  ;;  %s2605_s20 = int_to_ptr.vmem [resolvable:$true] %s2604_s20 }
 0x239   :  { %s3591_s10 = scalar_lea.vmem %s2605_s20, 128  ;;  %p3596_p7 = scmp.lt.s32.totalorder %s2605_s20, %s2605_s20 }
 0x23a   :  { %p3592_p6 = scmp.ne.s32.totalorder %s2605_s20, %s3591_s10  ;;  %p3597_p8 = scmp.lt.s32.totalorder %s3591_s10, %s3591_s10 }
 0x23b   :  { %2132 = vmatpush1.bf16.msra.mxu0 %v3414_v58 }
 0x23c   :  { %2133 = vmatprep.subr.bf16.mxu0 %v3419_v59  ;;  %p3598_p9 = por %p3597_p8, %p3596_p7 }
 0x23e   :  { %p3599_p10 = pnand %p3598_p9, %p3592_p6 }
 0x23f   :  { %2134 = vmatpush1.bf16.msra.mxu0 %v3417_v60 }
 0x240   :  { %2135 = vmatprep.subr.bf16.mxu0 %v3422_v62 }
 0x243   :  { %2136 = vmatpush1.bf16.msra.mxu0 %v3420_v63 }
 0x244   :  { %2137 = vmatprep.subr.bf16.mxu0 %v3425_v2  ;;  %v2910_v2 = vld [vmem:[%s3956_s12] ss:$0 sm:$0xff] }
 0x247   :  { %2138 = vmatpush1.bf16.msra.mxu0 %v3423_v3 }
 0x248   :  { %2139 = vmatprep.subr.bf16.mxu0 %v3428_v5 }
 0x24b   :  { %2140 = vmatpush1.bf16.msra.mxu0 %v3426_v6 }
 0x24e   :  { %2142 = vmatmul.mubr.bf16.vlgmr.msra.gmra.mrb[4].mxu0 %v1670_v8 }
 0x321   :  { %v2143_v21 = vpop.f32.mrb[4].mxu0 }
 0x322   :  { %v2999_v22 = vadd.f32 %v2143_v21, %v1741_v19  ;;  %v2145_v23 = vpop.f32.mrb[5].mxu0 }
 0x323   :  { %v3000_v24 = vadd.f32 %v2145_v23, %v1745_v20  ;;  %v2147_v25 = vpop.f32.mrb[6].mxu0 }
 0x324   :  { %v2150_v26 = vmax.f32 %v2999_v22, 0.0  ;;  %v2148_v27 = vpop.f32.mrb[7].mxu0 }
 0x325   :  { %v2151_v28 = vmax.f32 %v3000_v24, 0.0 }
 0x326   :  { %v2152_v31 = vpack.c.bf16 %v2150_v26, %v2150_v26 }
 0x327   :  { %v2153_v29 = vpack.c.bf16 %v2151_v28, %v2151_v28 }
 0x329   :  { %2321 = vmatprep.mubr.bf16.mxu1 %v2153_v29 }
 0x32a   :  { %2322 = vmatmul.mubr.bf16.vlgmr.msra.gmra.mrb[8].mxu1 %v2152_v31 }
 0x32b   :  { %2954 = vmatpush3.bf16.msra.mxu1 %v3445_v30  ;;  %2969 = vmatprep.mubr.msk.bf16.mxu1 %vm3635_vm1, %v3634_v17 }
 0x32c   :  { %2955 = vmatprep.subr.bf16.mxu1 %v3634_v17 }
 0x32f   :  { %2956 = vmatpush3.bf16.msra.mxu1 %v3446_v11 }
 0x330   :  { %2957 = vmatprep.subr.bf16.mxu1 %v3634_v17 }
 0x333   :  { %2958 = vmatpush3.bf16.msra.mxu1 %v3447_v12 }
 0x334   :  { %2959 = vmatprep.subr.bf16.mxu1 %v3634_v17 }
 0x337   :  { %2960 = vmatpush3.bf16.msra.mxu1 %v3448_v14 }
 0x338   :  { %2961 = vmatprep.subr.bf16.mxu1 %v3634_v17 }
 0x33b   :  { %2962 = vmatpush3.bf16.msra.mxu1 %v3449_v32 }
 0x33c   :  { %2963 = vmatprep.subr.bf16.mxu1 %v3634_v17 }
 0x33f   :  { %2964 = vmatpush3.bf16.msra.mxu1 %v3450_v33 }
 0x340   :  { %2965 = vmatprep.subr.bf16.mxu1 %v3634_v17 }
 0x343   :  { %2966 = vmatpush3.bf16.msra.mxu1 %v3451_v34 }
 0x344   :  { %2967 = vmatprep.subr.bf16.mxu1 %v3634_v17 }
 0x347   :  { %2968 = vmatpush3.bf16.msra.mxu1 %v3452_v35 }
 0x348   :  { %2973 = vmatprep.subr.bf16.mxu1 %v3634_v17 }
 0x3fd   :  { %v2930_v36 = vpop.f32.mrb[8].mxu1 }
 0x3fe   :  { %v2931_v38 = vpop.f32.mrb[9].mxu1 }
 0x3ff   :  { %v2932_v0 = vadd.f32 %v2931_v38, %v2930_v36  ;;  %v2933_v39 = vpop.f32.mrb[10].mxu1 }
 0x400   :  { %v2934_v40 = vpop.f32.mrb[11].mxu1 }
 0x401   :  { %v2324_v41 = vadd.f32 %v2932_v0, %v2878_v37 }
 0x403   :  { %v2329_v42 = vmax.f32 %v2324_v41, 0.0 }
 0x405   :  { %v2330_v44 = vpack.c.bf16 %v2329_v42, %v2329_v42 }
 0x407   :  { %2970 = vmatmul.mubr.bf16.vlgmr.msra.gmra.mrb[12].mxu1 %v2330_v44 }
 0x408   :  { %2974 = vmatpush3.bf16.msra.mxu1 %v3453_v43  ;;  %2981 = vmatprep.mubr.msk.bf16.mxu1 %vm3635_vm1, %v3634_v17 }
 0x409   :  { %2975 = vmatprep.subr.bf16.mxu1 %v3634_v17 }
 0x40c   :  { %2976 = vmatpush3.bf16.msra.mxu1 %v3454_v10 }
 0x40d   :  { %2977 = vmatprep.subr.bf16.mxu1 %v3634_v17 }
 0x410   :  { %2978 = vmatpush3.bf16.msra.mxu1 %v3455_v45 }
 0x411   :  { %2979 = vmatprep.subr.bf16.mxu1 %v3634_v17 }
 0x414   :  { %2980 = vmatpush3.bf16.msra.mxu1 %v3456_v46 }
 0x415   :  { %2985 = vmatprep.subr.bf16.mxu1 %v3634_v17 }
 0x4da   :  { %v2436_v48 = vpop.f32.mrb[12].mxu1 }
 0x4db   :  { %v2437_v49 = vadd.f32 %v2895_v47, %v2436_v48  ;;  %v2971_v50 = vpop.f32.mrb[13].mxu1 }
 0x4dc   :  { %v2439_v51 = vpop.f32.mrb[14].mxu1 }
 0x4dd   :  { %v2442_v52 = vmax.f32 %v2437_v49, 0.0  ;;  %v2972_v53 = vpop.f32.mrb[15].mxu1 }
 0x4df   :  { %v2443_v55 = vpack.c.bf16 %v2442_v52, %v2442_v52 }
 0x4e1   :  { %2982 = vmatmul.mubr.msk.bf16.vlgmr.msra.gmra.mrb[16].mxu1 %vm2483_vm2, %v2443_v55 }
 0x4e2   :  { %2986 = vmatpush3.bf16.msra.mxu1 %v3457_v54  ;;  %2989 = vmatprep.mubr.msk.bf16.mxu1 %vm3635_vm1, %v3634_v17 }
 0x4e3   :  { %2987 = vmatprep.subr.bf16.mxu1 %v3634_v17 }
 0x4e6   :  { %2988 = vmatpush3.bf16.msra.mxu1 %v3458_v56 }
 0x5b4   :  { %v2521_v58 = vpop.f32.mrb[16].mxu1 }
 0x5b5   :  { %v2522_v59 = vadd.f32 %v2904_v57, %v2521_v58  ;;  %v2983_v60 = vpop.f32.mrb[17].mxu1 }
 0x5b6   :  { %v2524_v61 = vpop.f32.mrb[18].mxu1 }
 0x5b7   :  { %v2527_v62 = vmax.f32 %v2522_v59, 0.0  ;;  %v2984_v63 = vpop.f32.mrb[19].mxu1 }
 0x5b9   :  { %v2528_v1 = vpack.c.bf16 %v2527_v62, %v2527_v62 }
 0x5bb   :  { %2990 = vmatmul.mubr.msk.bf16.vlgmr.msra.gmra.mrb[20].mxu1 %vm2552_vm3, %v2528_v1 }
 0x68e   :  { %v2590_v3 = vpop.f32.mrb[20].mxu1 }
 0x68f   :  { %v2591_v4 = vadd.f32 %v2910_v2, %v2590_v3  ;;  %v2991_v5 = vpop.f32.mrb[21].mxu1 }
 0x690   :  { %v2593_v6 = vpop.f32.mrb[22].mxu1 }
 0x691   :  { %v2596_v7 = vmax.f32 %v2591_v4, 0.0  ;;  %v2992_v8 = vpop.f32.mrb[23].mxu1 }
 0x693   :  { %2597 = vst [vmem:[#allocation13] sm:$0xff] %v2596_v7 }
 0x694   :  { %3602 = shalt.err (!%p3599_p10)
}
 0x695   :  { %s3603_s12 = scalar_lea.hbm %s3957_s13, 128 }
 0x696   :  { %p3604_p11 = scmp.ne.s32.totalorder %s3957_s13, %s3603_s12  ;;  %p3607_p12 = scmp.lt.u32.totalorder %s3603_s12, %s3957_s13 }
 0x698   :  { %p3609_p13 = pnand %p3607_p12, %p3604_p11 }
 0x69a   :  { %3612 = shalt.err (!%p3609_p13)
}
 0x69b   :  { %2607 = dma.vmem_to_hbm [thread:$0]  %s2605_s20, 128, %s3957_s13, [#allocation4]  }
 0x69c   :  { %3621 = dma.done.wait [#allocation4], 128  }
 0x69d   :  { %3622 = vsyncadd [#allocation4], 4294967168 }
 0x69e   :  { %2611 = vsyncpa [#allocation3], 1 }
 0x69f   :  { %2612 = vsyncpa [#allocation6], 1 }
 0x6a0   :  { %2613 = vsyncpa [#allocation9], 1 }
 0x6a1   :  { %2614 = vsyncpa [#allocation12], 1 }
 0x6a2   :  { %2615 = vsyncpa [#allocation4], 1 }

</bundles_post_ra>
